<compile_context>
chip_gen: v7x
topology: tpu7x:2x2x1
jax: 0.10.0
libtpu: 0.0.40
codegen_flags: <defaults>
</compile_context>

<pallas_src>
import functools

import jax
import jax.numpy as jnp
import numpy as np
from jax.experimental import pallas as pl
from jax.experimental.pallas import tpu as pltpu

_D_PAD = 8  # coords embedded as [-2x, |x|^2, 1] (D+2 <= 8) and padded to 8 lanes


def _round_up(n, m):
    return ((n + m - 1) // m) * m


def _pick_tile(n_pad, candidates):
    for c in candidates:
        if c <= n_pad and n_pad % c == 0:
            return c
    return 128


def _dist_loss_kernel(i_ids_ref, j_ids_ref, rows_ref, cols_ref, tgt_ref,
                      out_ref, acc_ref, *, n_valid, bb, tm, tn):
    # grid = (tile, batch_block); batch_block MUST be the innermost grid axis and the
    # output index_map MUST ignore it (output/acc stay resident across the batch and
    # are finalized only at the last batch step).
    t = pl.program_id(0)
    b = pl.program_id(1)
    nb = pl.num_programs(1)

    tgt = tgt_ref[...]                      # (TM, TN) target distances (resident)

    # Per-step partial: sum over the BB batch elements of this batch block.
    part = None
    for k in range(bb):                     # static unroll
        r = rows_ref[k]                     # (TM, 8)  = [-2x, |x|^2, 1, 0...]
        c = cols_ref[k]                     # (8, TN)  = [ y ,  1 , |y|^2, 0...]^T
        # Homogeneous-embedding dot -> squared pairwise distances, on the idle MXU.
        d2 = jnp.dot(r, c, preferred_element_type=jnp.float32,
                     precision=jax.lax.Precision.HIGHEST)
        dist = jnp.sqrt(jnp.maximum(d2, 0.0))
        # TODO(synk): forward-only; jnp.sqrt at d2==0 has an inf/NaN gradient -- add
        # an eps guard or a custom VJP before differentiating this kernel.
        contrib = jnp.abs(tgt - dist)
        part = contrib if part is None else part + contrib

    @pl.when(b == 0)
    def _():
        acc_ref[...] = part                 # first step writes (no zero-init pass)

    @pl.when(b != 0)
    def _():
        acc_ref[...] = acc_ref[...] + part

    @pl.when(b == nb - 1)
    def _():
        # Strict-upper AND valid-point mask, built once per tile (no HBM stream).
        i0 = i_ids_ref[t] * tm
        j0 = j_ids_ref[t] * tn
        row_g = i0 + jax.lax.broadcasted_iota(jnp.int32, (tm, tn), 0)
        col_g = j0 + jax.lax.broadcasted_iota(jnp.int32, (tm, tn), 1)
        mask = jnp.logical_and(row_g < col_g, col_g < n_valid).astype(jnp.float32)
        masked = acc_ref[...] * mask
        # Fold TM rows down to 8 sublanes with plain VALU adds -> unmasked vst.
        red = masked[0:8, :]
        for g in range(1, tm // 8):
            red = red + masked[g * 8:(g + 1) * 8, :]
        out_ref[...] = red[None]


def make_dist_loss(dists, self_interaction_included=True):
    """Builds the Pallas equivalent of DistLoss(dists).forward (default path)."""
    if not self_interaction_included:
        # TODO(synk): the module's offset-0 path pairs offset-0 flattened dists with
        # (N+1)-sized triu indices (out of range of an NxN cdist); only the default
        # strict-upper path is implemented.
        raise NotImplementedError("only self_interaction_included=True supported")

    dists_np = np.asarray(dists, np.float32)
    N = int(dists_np.shape[-1])
    assert N >= 2
    iu, ju = np.triu_indices(N, k=1)

    # ---- tiling: pad N to 128 only, then largest tiles that divide N_pad ----------
    N_pad = _round_up(N, 128)
    TM = _pick_tile(N_pad, (512, 256, 128))
    TN = _pick_tile(N_pad, (1024, 512, 256, 128))
    num_i, num_j = N_pad // TM, N_pad // TN

    # Dense padded target (only strict-upper valid entries are ever read after mask).
    t_np = np.zeros((N_pad, N_pad), np.float32)
    t_np[iu, ju] = dists_np[iu, ju]
    t_pad = jnp.asarray(t_np)

    # Enumerate only tiles that intersect the valid strict upper triangle.
    blist = []
    for bi in range(num_i):
        r0 = bi * TM
        if r0 >= N:
            break
        for bj in range(num_j):
            c0 = bj * TN
            c1 = min(c0 + TN, N)
            if c0 < N and c1 - 1 > r0:
                blist.append((bi, bj))
    num_blocks = len(blist)
    assert num_blocks >= 1
    # TODO(synk): on v7x a single-block grid leaves one TensorCore idle; a
    # per-(tile,batch) partial-output restructure would fix tiny-N cases.
    i_ids = jnp.asarray([bi for bi, _ in blist], jnp.int32)
    j_ids = jnp.asarray([bj for _, bj in blist], jnp.int32)

    def forward(coords):
        B, Nc, Dc = coords.shape
        assert Nc == N and Dc + 2 <= _D_PAD

        # Batch block size: largest divisor of B that is <= 8 (no batch padding).
        BB = 1
        for cand in range(min(B, 8), 0, -1):
            if B % cand == 0:
                BB = cand
                break

        x = coords.astype(jnp.float32)
        nsq = jnp.sum(x * x, axis=-1, keepdims=True)               # (B, N, 1)
        one = jnp.ones_like(nsq)
        # Homogeneous embedding so one MXU dot yields squared distances directly.
        rows = jnp.concatenate([-2.0 * x, nsq, one], axis=-1)       # (B, N, D+2)
        cols = jnp.concatenate([x, one, nsq], axis=-1)              # (B, N, D+2)
        pad_d = _D_PAD - (Dc + 2)
        rows = jnp.pad(rows, ((0, 0), (0, N_pad - N), (0, pad_d))) # (B, N_pad, 8)
        cols = jnp.pad(cols, ((0, 0), (0, N_pad - N), (0, pad_d)))
        colsT = jnp.transpose(cols, (0, 2, 1))                      # (B, 8, N_pad)

        # Explicit VMEM budget (needed on v5e where scoped default is 16 MiB).
        tile_bytes = TM * TN * 4
        vmem_est = (2 * tile_bytes                      # target, double-buffered
                    + tile_bytes                        # acc scratch
                    + 2 * BB * (TM + TN) * _D_PAD * 4   # coord tiles, double-buffered
                    + 2 * 8 * TN * 4)                   # output tile
        vmem_limit = int(min(vmem_est + (16 << 20), 40 << 20))

        out = pl.pallas_call(
            functools.partial(_dist_loss_kernel, n_valid=N, bb=BB, tm=TM, tn=TN),
            out_shape=jax.ShapeDtypeStruct((num_blocks, 8, TN), jnp.float32),
            grid_spec=pltpu.PrefetchScalarGridSpec(
                num_scalar_prefetch=2,
                grid=(num_blocks, B // BB),
                in_specs=[
                    # row features of tile t, batch block b
                    pl.BlockSpec((BB, TM, _D_PAD),
                                 lambda t, b, ii, jj: (b, ii[t], 0)),
                    # transposed column features of tile t, batch block b
                    pl.BlockSpec((BB, _D_PAD, TN),
                                 lambda t, b, ii, jj: (b, 0, jj[t])),
                    # target tile: index ignores b -> VMEM-resident across the batch
                    pl.BlockSpec((TM, TN), lambda t, b, ii, jj: (ii[t], jj[t])),
                ],
                out_specs=pl.BlockSpec((1, 8, TN), lambda t, b, ii, jj: (t, 0, 0)),
                scratch_shapes=[pltpu.VMEM((TM, TN), jnp.float32)],
            ),
            compiler_params=pltpu.CompilerParams(
                dimension_semantics=("parallel", "arbitrary"),
                vmem_limit_bytes=vmem_limit),
        )(i_ids, j_ids, rows, colsT, t_pad)
        return jnp.sum(out)

    return forward


if __name__ == "__main__":
    key = jax.random.PRNGKey(0)
    k_ref, k_in = jax.random.split(key)

    B, N, D = 2, 16, 3

    # ---- deterministic "module parameters" (equivalent of __init__) --------------
    ref_coords = jax.random.normal(k_ref, (N, D), jnp.float32)
    diffs = ref_coords[:, None, :] - ref_coords[None, :, :]
    dists = jnp.sqrt(jnp.sum(diffs * diffs, axis=-1))               # (N, N)

    forward = make_dist_loss(dists, self_interaction_included=True)

    # ---- forward input ------------------------------------------------------------
    coords = jax.random.normal(k_in, (B, N, D), jnp.float32)
    loss = jax.block_until_ready(forward(coords))

    # pure-JAX reference of the PyTorch forward
    iu, ju = np.triu_indices(N, k=1)
    cd = jnp.sqrt(jnp.sum(
        (coords[:, :, None, :] - coords[:, None, :, :]) ** 2, axis=-1))
    ref = jnp.sum(jnp.abs(dists[iu, ju][None, :] - cd[:, iu, ju]))

    assert np.allclose(np.asarray(loss), np.asarray(ref), rtol=5e-4, atol=5e-2), \
        (float(loss), float(ref))
    print("KERNEL_OK")
</pallas_src>

<mosaic_0001>
module attributes {stable_mosaic.version = 11 : i64} {
  func.func @_dist_loss_kernel(%arg0: i32, %arg1: i32, %arg2: memref<1xi32, #tpu.memory_space<smem>>, %arg3: memref<1xi32, #tpu.memory_space<smem>>, %arg4: memref<2x128x8xf32, #tpu.memory_space<vmem>>, %arg5: memref<2x8x128xf32, #tpu.memory_space<vmem>>, %arg6: memref<128x128xf32, #tpu.memory_space<vmem>>, %arg7: memref<1x8x128xf32, #tpu.memory_space<vmem>>, %arg8: memref<128x128xf32, #tpu.memory_space<vmem>>) attributes {dimension_semantics = [#tpu.dimension_semantics<parallel>, #tpu.dimension_semantics<arbitrary>], iteration_bounds = array<i64: 1, 1>, scalar_prefetch = 2 : i64, scratch_operands = 1 : i64, tpu.core_type = #tpu.core_type<tc>, window_params = [{transform_indices = @transform_0, window_bounds = array<i64: 2, 128, 8>}, {transform_indices = @transform_1, window_bounds = array<i64: 2, 8, 128>}, {transform_indices = @transform_2, window_bounds = array<i64: 128, 128>}, {transform_indices = @transform_3, window_bounds = array<i64: 1, 8, 128>}]} {
    %c0 = arith.constant 0 : index
    %c0_0 = arith.constant 0 : index
    %0 = vector.load %arg6[%c0, %c0_0] : memref<128x128xf32, #tpu.memory_space<vmem>>, vector<128x128xf32>
    %c0_1 = arith.constant 0 : index
    %c0_2 = arith.constant 0 : index
    %c0_3 = arith.constant 0 : index
    %1 = vector.load %arg4[%c0_1, %c0_2, %c0_3] : memref<2x128x8xf32, #tpu.memory_space<vmem>>, vector<1x128x8xf32>
    %2 = vector.shape_cast %1 : vector<1x128x8xf32> to vector<128x8xf32>
    %c0_4 = arith.constant 0 : index
    %c0_5 = arith.constant 0 : index
    %c0_6 = arith.constant 0 : index
    %3 = vector.load %arg5[%c0_4, %c0_5, %c0_6] : memref<2x8x128xf32, #tpu.memory_space<vmem>>, vector<1x8x128xf32>
    %4 = vector.shape_cast %3 : vector<1x8x128xf32> to vector<8x128xf32>
    %cst = arith.constant dense<0.000000e+00> : vector<128x128xf32>
    %5 = tpu.matmul %2, %4, %cst {dimension_numbers = #tpu.dot_dimension_numbers<[1], [0], [0], [1], [0, 0, 1, 1], [], []>, precision = #tpu.contract_precision<fp32>} : vector<128x8xf32>, vector<8x128xf32>, vector<128x128xf32> -> vector<128x128xf32>
    %cst_7 = arith.constant 0.000000e+00 : f32
    %6 = vector.broadcast %cst_7 : f32 to vector<128x128xf32>
    %7 = arith.maximumf %5, %6 : vector<128x128xf32>
    %8 = math.sqrt %7 : vector<128x128xf32>
    %9 = arith.subf %0, %8 : vector<128x128xf32>
    %10 = math.absf %9 : vector<128x128xf32>
    %c1 = arith.constant 1 : index
    %c0_8 = arith.constant 0 : index
    %c0_9 = arith.constant 0 : index
    %11 = vector.load %arg4[%c1, %c0_8, %c0_9] : memref<2x128x8xf32, #tpu.memory_space<vmem>>, vector<1x128x8xf32>
    %12 = vector.shape_cast %11 : vector<1x128x8xf32> to vector<128x8xf32>
    %c1_10 = arith.constant 1 : index
    %c0_11 = arith.constant 0 : index
    %c0_12 = arith.constant 0 : index
    %13 = vector.load %arg5[%c1_10, %c0_11, %c0_12] : memref<2x8x128xf32, #tpu.memory_space<vmem>>, vector<1x8x128xf32>
    %14 = vector.shape_cast %13 : vector<1x8x128xf32> to vector<8x128xf32>
    %cst_13 = arith.constant dense<0.000000e+00> : vector<128x128xf32>
    %15 = tpu.matmul %12, %14, %cst_13 {dimension_numbers = #tpu.dot_dimension_numbers<[1], [0], [0], [1], [0, 0, 1, 1], [], []>, precision = #tpu.contract_precision<fp32>} : vector<128x8xf32>, vector<8x128xf32>, vector<128x128xf32> -> vector<128x128xf32>
    %cst_14 = arith.constant 0.000000e+00 : f32
    %16 = vector.broadcast %cst_14 : f32 to vector<128x128xf32>
    %17 = arith.maximumf %15, %16 : vector<128x128xf32>
    %18 = math.sqrt %17 : vector<128x128xf32>
    %19 = arith.subf %0, %18 : vector<128x128xf32>
    %20 = math.absf %19 : vector<128x128xf32>
    %21 = arith.addf %10, %20 : vector<128x128xf32>
    %c0_i32 = arith.constant 0 : i32
    %22 = arith.cmpi eq, %arg1, %c0_i32 : i32
    %23 = arith.extui %22 : i1 to i32
    %c0_i32_15 = arith.constant 0 : i32
    %24 = arith.cmpi ne, %23, %c0_i32_15 : i32
    scf.if %24 {
      %c0_20 = arith.constant 0 : index
      %c0_21 = arith.constant 0 : index
      %31 = vector.load %arg8[%c0_20, %c0_21] : memref<128x128xf32, #tpu.memory_space<vmem>>, vector<128x128xf32>
      tpu.vector_store %arg8[%c0_20, %c0_21], %21 {strides = array<i32>} : memref<128x128xf32, #tpu.memory_space<vmem>>, vector<128x128xf32>,
    } else {
    }
    %c0_i32_16 = arith.constant 0 : i32
    %25 = arith.cmpi ne, %arg1, %c0_i32_16 : i32
    %26 = arith.extui %25 : i1 to i32
    %c0_i32_17 = arith.constant 0 : i32
    %27 = arith.cmpi ne, %26, %c0_i32_17 : i32
    scf.if %27 {
      %c0_20 = arith.constant 0 : index
      %c0_21 = arith.constant 0 : index
      %31 = vector.load %arg8[%c0_20, %c0_21] : memref<128x128xf32, #tpu.memory_space<vmem>>, vector<128x128xf32>
      %32 = arith.addf %31, %21 : vector<128x128xf32>
      %c0_22 = arith.constant 0 : index
      %c0_23 = arith.constant 0 : index
      %33 = vector.load %arg8[%c0_22, %c0_23] : memref<128x128xf32, #tpu.memory_space<vmem>>, vector<128x128xf32>
      tpu.vector_store %arg8[%c0_22, %c0_23], %32 {strides = array<i32>} : memref<128x128xf32, #tpu.memory_space<vmem>>, vector<128x128xf32>,
    } else {
    }
    %c0_i32_18 = arith.constant 0 : i32
    %28 = arith.cmpi eq, %arg1, %c0_i32_18 : i32
    %29 = arith.extui %28 : i1 to i32
    %c0_i32_19 = arith.constant 0 : i32
    %30 = arith.cmpi ne, %29, %c0_i32_19 : i32
    scf.if %30 {
      %31 = arith.index_cast %arg0 : i32 to index
      %32 = memref.load %arg2[%31] : memref<1xi32, #tpu.memory_space<smem>>
      %c128_i32 = arith.constant 128 : i32
      %33 = arith.muli %32, %c128_i32 : i32
      %34 = arith.index_cast %arg0 : i32 to index
      %35 = memref.load %arg3[%34] : memref<1xi32, #tpu.memory_space<smem>>
      %c128_i32_20 = arith.constant 128 : i32
      %36 = arith.muli %35, %c128_i32_20 : i32
      %37 = tpu.iota {dimensions = array<i32: 0>} : vector<128x128xi32>
      %38 = vector.broadcast %33 : i32 to vector<128x128xi32>
      %39 = arith.addi %38, %37 : vector<128x128xi32>
      %40 = tpu.iota {dimensions = array<i32: 1>} : vector<128x128xi32>
      %41 = vector.broadcast %36 : i32 to vector<128x128xi32>
      %42 = arith.addi %41, %40 : vector<128x128xi32>
      %43 = arith.cmpi slt, %39, %42 : vector<128x128xi32>
      %c16_i32 = arith.constant 16 : i32
      %44 = vector.broadcast %c16_i32 : i32 to vector<128x128xi32>
      %45 = arith.cmpi slt, %42, %44 : vector<128x128xi32>
      %46 = arith.andi %43, %45 : vector<128x128xi1>
      %47 = arith.extui %46 : vector<128x128xi1> to vector<128x128xi32>
      %48 = arith.sitofp %47 : vector<128x128xi32> to vector<128x128xf32>
      %c0_21 = arith.constant 0 : index
      %c0_22 = arith.constant 0 : index
      %49 = vector.load %arg8[%c0_21, %c0_22] : memref<128x128xf32, #tpu.memory_space<vmem>>, vector<128x128xf32>
      %50 = arith.mulf %49, %48 : vector<128x128xf32>
      %51 = vector.extract_strided_slice %50 {offsets = [0, 0], sizes = [8, 128], strides = [1, 1]} : vector<128x128xf32> to vector<8x128xf32>
      %52 = vector.extract_strided_slice %50 {offsets = [8, 0], sizes = [8, 128], strides = [1, 1]} : vector<128x128xf32> to vector<8x128xf32>
      %53 = arith.addf %51, %52 : vector<8x128xf32>
      %54 = vector.extract_strided_slice %50 {offsets = [16, 0], sizes = [8, 128], strides = [1, 1]} : vector<128x128xf32> to vector<8x128xf32>
      %55 = arith.addf %53, %54 : vector<8x128xf32>
      %56 = vector.extract_strided_slice %50 {offsets = [24, 0], sizes = [8, 128], strides = [1, 1]} : vector<128x128xf32> to vector<8x128xf32>
      %57 = arith.addf %55, %56 : vector<8x128xf32>
      %58 = vector.extract_strided_slice %50 {offsets = [32, 0], sizes = [8, 128], strides = [1, 1]} : vector<128x128xf32> to vector<8x128xf32>
      %59 = arith.addf %57, %58 : vector<8x128xf32>
      %60 = vector.extract_strided_slice %50 {offsets = [40, 0], sizes = [8, 128], strides = [1, 1]} : vector<128x128xf32> to vector<8x128xf32>
      %61 = arith.addf %59, %60 : vector<8x128xf32>
      %62 = vector.extract_strided_slice %50 {offsets = [48, 0], sizes = [8, 128], strides = [1, 1]} : vector<128x128xf32> to vector<8x128xf32>
      %63 = arith.addf %61, %62 : vector<8x128xf32>
      %64 = vector.extract_strided_slice %50 {offsets = [56, 0], sizes = [8, 128], strides = [1, 1]} : vector<128x128xf32> to vector<8x128xf32>
      %65 = arith.addf %63, %64 : vector<8x128xf32>
      %66 = vector.extract_strided_slice %50 {offsets = [64, 0], sizes = [8, 128], strides = [1, 1]} : vector<128x128xf32> to vector<8x128xf32>
      %67 = arith.addf %65, %66 : vector<8x128xf32>
      %68 = vector.extract_strided_slice %50 {offsets = [72, 0], sizes = [8, 128], strides = [1, 1]} : vector<128x128xf32> to vector<8x128xf32>
      %69 = arith.addf %67, %68 : vector<8x128xf32>
      %70 = vector.extract_strided_slice %50 {offsets = [80, 0], sizes = [8, 128], strides = [1, 1]} : vector<128x128xf32> to vector<8x128xf32>
      %71 = arith.addf %69, %70 : vector<8x128xf32>
      %72 = vector.extract_strided_slice %50 {offsets = [88, 0], sizes = [8, 128], strides = [1, 1]} : vector<128x128xf32> to vector<8x128xf32>
      %73 = arith.addf %71, %72 : vector<8x128xf32>
      %74 = vector.extract_strided_slice %50 {offsets = [96, 0], sizes = [8, 128], strides = [1, 1]} : vector<128x128xf32> to vector<8x128xf32>
      %75 = arith.addf %73, %74 : vector<8x128xf32>
      %76 = vector.extract_strided_slice %50 {offsets = [104, 0], sizes = [8, 128], strides = [1, 1]} : vector<128x128xf32> to vector<8x128xf32>
      %77 = arith.addf %75, %76 : vector<8x128xf32>
      %78 = vector.extract_strided_slice %50 {offsets = [112, 0], sizes = [8, 128], strides = [1, 1]} : vector<128x128xf32> to vector<8x128xf32>
      %79 = arith.addf %77, %78 : vector<8x128xf32>
      %80 = vector.extract_strided_slice %50 {offsets = [120, 0], sizes = [8, 128], strides = [1, 1]} : vector<128x128xf32> to vector<8x128xf32>
      %81 = arith.addf %79, %80 : vector<8x128xf32>
      %82 = vector.shape_cast %81 : vector<8x128xf32> to vector<1x8x128xf32>
      %c0_23 = arith.constant 0 : index
      %c0_24 = arith.constant 0 : index
      %c0_25 = arith.constant 0 : index
      %83 = vector.load %arg7[%c0_23, %c0_24, %c0_25] : memref<1x8x128xf32, #tpu.memory_space<vmem>>, vector<1x8x128xf32>
      tpu.vector_store %arg7[%c0_23, %c0_24, %c0_25], %82 {strides = array<i32>} : memref<1x8x128xf32, #tpu.memory_space<vmem>>, vector<1x8x128xf32>,
    } else {
    }
    return
  }
  func.func @transform_0(%arg0: i32, %arg1: i32, %arg2: memref<1xi32, #tpu.memory_space<smem>>, %arg3: memref<1xi32, #tpu.memory_space<smem>>) -> (i32, i32, i32) {
    %0 = arith.index_cast %arg0 : i32 to index
    %1 = memref.load %arg2[%0] : memref<1xi32, #tpu.memory_space<smem>>
    %c0_i32 = arith.constant 0 : i32
    %c0_i32_0 = arith.constant 0 : i32
    return %arg1, %1, %c0_i32 : i32, i32, i32
  }
  func.func @transform_1(%arg0: i32, %arg1: i32, %arg2: memref<1xi32, #tpu.memory_space<smem>>, %arg3: memref<1xi32, #tpu.memory_space<smem>>) -> (i32, i32, i32) {
    %0 = arith.index_cast %arg0 : i32 to index
    %1 = memref.load %arg3[%0] : memref<1xi32, #tpu.memory_space<smem>>
    %c0_i32 = arith.constant 0 : i32
    %c0_i32_0 = arith.constant 0 : i32
    return %arg1, %c0_i32, %1 : i32, i32, i32
  }
  func.func @transform_2(%arg0: i32, %arg1: i32, %arg2: memref<1xi32, #tpu.memory_space<smem>>, %arg3: memref<1xi32, #tpu.memory_space<smem>>) -> (i32, i32) {
    %0 = arith.index_cast %arg0 : i32 to index
    %1 = memref.load %arg2[%0] : memref<1xi32, #tpu.memory_space<smem>>
    %2 = arith.index_cast %arg0 : i32 to index
    %3 = memref.load %arg3[%2] : memref<1xi32, #tpu.memory_space<smem>>
    %c0_i32 = arith.constant 0 : i32
    return %1, %3 : i32, i32
  }
  func.func @transform_3(%arg0: i32, %arg1: i32, %arg2: memref<1xi32, #tpu.memory_space<smem>>, %arg3: memref<1xi32, #tpu.memory_space<smem>>) -> (i32, i32, i32) {
    %c0_i32 = arith.constant 0 : i32
    %c0_i32_0 = arith.constant 0 : i32
    %c0_i32_1 = arith.constant 0 : i32
    return %arg0, %c0_i32, %c0_i32_0 : i32, i32, i32
  }
}

</mosaic_0001>

<bundles_post_ra>
// kernel: tpu_custom_call.1
= control target key start
LH: loop header
LB: loop body
LE: loop exit
PB: predicated region body
PF: predicated region fallthrough
CT: control target
= control target key end

     0   :  { %s5244_s0 = inlined_call_operand.<no memory space> [shape: s32[1], index: 0, kind: input, shape index: {}]   ;;  %s5245_s1 = inlined_call_operand.<no memory space> [shape: s32[1], index: 1, kind: input, shape index: {}]   ;;  %s5246_s2 = inlined_call_operand.vmem [shape: f32[2,128,8], index: 2, kind: input, shape index: {}]   ;;  %s5247_s3 = inlined_call_operand.vmem [shape: f32[2,8,128], index: 3, kind: input, shape index: {}]   ;;  %s5248_s4 = inlined_call_operand.vmem [shape: f32[128,128], index: 4, kind: input, shape index: {}]   ;;  %s5249_s5 = inlined_call_operand.hbm [shape: f32[1,8,128], index: 5, kind: output, shape index: {}]  }
   0x1   :  { %s3026_s20 = sshll.u32 %s5244_s0, 4  ;;  %p76_p0 = scmp.lt.s32.totalorder %s5245_s1, 0 }
   0x2   :  { %12 = vsyncpa [#allocation7], 0  ;;  %p69_p1 = scmp.lt.s32.totalorder %s3026_s20, 15  ;;  %vm127_vm0 = vcmask 64512   ;;  %s3048_s10 = sshll.u32 %s5244_s0, 7 }
   0x3   :  { %s3873_s25 = scalar_select %p76_p0, %s5245_s1, 0 }
   0x4   :  { %s5447_s20 = smov (!%p69_p1, %s3026_s20), 15  ;;  %s3049_s13 = sshll.u32 %s5245_s1, 7 }
   0x5   :  { %s3028_s26 = sshll.u32 %s3873_s25, 3  ;;  %s3027_s27 = sshll.u32 %s5447_s20, 3 }
   0x6   :  { %s79_s30 = scalar_lea.vmem %s5247_s3, %s3028_s26  ;;  %s3885_s8 = scalar_lea.vmem %s5246_s2, %s3027_s27 }
   0x7   :  { %s88_s9 = sadd.s32 %s3873_s25, %s5447_s20  ;;  %v126_v0 = vld [vmem:[%s79_s30] sm:$0xff]  ;;  %v3047_v1 = vld [vmem:[%s79_s30 + $0x8] sm:$0xff]  ;;  %v112_v11 = vld [vmem:[%s3885_s8 + $0x10] sm:$0xff] }
   0x8   :  { %v3889_v2 = vand.u32 4294901760, %v126_v0  ;;  %v3891_v3 = vand.u32 4294901760, %v3047_v1  ;;  %v110_v4 = vld [vmem:[%s3885_s8] sm:$0xff]  ;;  %v111_v6 = vld [vmem:[%s3885_s8 + $0x8] sm:$0xff]  ;;  %v3033_v12 = vld [vmem:[%s3885_s8 + $0x90] sm:$0xff]  ;;  %v135_v19 = vsel %vm127_vm0, %v112_v11, 0 }
   0x9   :  { %v3031_v5 = vld [vmem:[%s3885_s8 + $0x80] sm:$0xff]  ;;  %v129_v7 = vsel %vm127_vm0, %v110_v4, 0  ;;  %v132_v9 = vsel %vm127_vm0, %v111_v6, 0  ;;  %v3032_v10 = vld [vmem:[%s3885_s8 + $0x88] sm:$0xff]  ;;  %v1453_v20 = vsel %vm127_vm0, %v3033_v12, 0  ;;  %v3938_v27 = vand.u32 4294901760, %v135_v19 }
   0xa   :  { %v1447_v8 = vsel %vm127_vm0, %v3031_v5, 0  ;;  %3270 = vmatprep.subr.mxu0 %v3889_v2  ;;  %3426 = vmatprep.subr.mxu1 %v3891_v3  ;;  %v3904_v13 = vand.u32 4294901760, %v129_v7  ;;  %v3907_v14 = vsub.f32 %v126_v0, %v3889_v2  ;;  %v3912_v16 = vsub.f32 %v3047_v1, %v3891_v3  ;;  %v113_v37 = vld [vmem:[%s3885_s8 + $0x18] sm:$0xff]  ;;  %v114_v47 = vld [vmem:[%s3885_s8 + $0x20] sm:$0xff]  ;;  %v115_v57 = vld [vmem:[%s3885_s8 + $0x28] sm:$0xff]  ;;  %s3030_s0 = sshll.u32 %s88_s9, 3 }
   0xb   :  { %v3909_v15 = vand.u32 4294901760, %v1447_v8  ;;  %3271 = vmatpush3.msra.mxu0 %v3889_v2  ;;  %3427 = vmatpush3.msra.mxu1 %v3891_v3  ;;  %v3916_v17 = vand.u32 4294901760, %v132_v9  ;;  %v1450_v18 = vsel %vm127_vm0, %v3032_v10, 0  ;;  %v3940_v28 = vand.u32 4294901760, %v1453_v20  ;;  %v3034_v38 = vld [vmem:[%s3885_s8 + $0x98] sm:$0xff]  ;;  %v3035_v48 = vld [vmem:[%s3885_s8 + $0xa0] sm:$0xff]  ;;  %s4558_s15 = scalar_lea.vmem %s5248_s4, %s3030_s0 }
   0xc   :  { %v3922_v21 = vsub.f32 %v129_v7, %v3904_v13  ;;  %v3925_v22 = vand.u32 4294901760, %v3907_v14  ;;  %v3931_v24 = vand.u32 4294901760, %v3912_v16  ;;  %v3936_v26 = vand.u32 4294901760, %v1450_v18  ;;  %v3036_v62 = vld [vmem:[%s3885_s8 + $0xa8] sm:$0xff]  ;;  %v116_v63 = vld [vmem:[%s3885_s8 + $0x30] sm:$0xff]  ;;  %s3833_s4 = smov [#allocation6]  }
   0xd   :  { %v3928_v23 = vsub.f32 %v1447_v8, %v3909_v15  ;;  %v3934_v25 = vsub.f32 %v132_v9, %v3916_v17  ;;  %v3953_v35 = vsub.f32 %v135_v19, %v3938_v27  ;;  %v3956_v36 = vsub.f32 %v1453_v20, %v3940_v28  ;;  %v3037_v10 = vld [vmem:[%s3885_s8 + $0xb0] sm:$0xff]  ;;  %s2997_s16 = sshll.u32 %s3833_s4, 4  ;;  %s2998_s16 = int_to_ptr.vmem [resolvable:$true] %s2997_s16 }
   0xe   :  { %v5266_v29 = vand.u32 4294901760, %v3922_v21  ;;  %v406_v30 = vsub.f32 %v3907_v14, %v3925_v22  ;;  %v1724_v32 = vsub.f32 %v3912_v16, %v3931_v24  ;;  %v3950_v34 = vsub.f32 %v1450_v18, %v3936_v26  ;;  %s3808_s17 = scalar_lea.vmem %s2998_s16, 128  ;;  %p3813_p3 = scmp.lt.s32.totalorder %s2998_s16, %s2998_s16 }
   0xf   :  { %v5264_v31 = vand.u32 4294901760, %v3928_v23  ;;  %v5262_v33 = vand.u32 4294901760, %v3934_v25  ;;  %v5260_v45 = vand.u32 4294901760, %v3953_v35  ;;  %v5259_v46 = vand.u32 4294901760, %v3956_v36  ;;  %p3809_p2 = scmp.ne.s32.totalorder %s2998_s16, %s3808_s17  ;;  %p3814_p4 = scmp.lt.s32.totalorder %s3808_s17, %s3808_s17 }
  0x10   :  { %v245_v39 = vsub.f32 %v3922_v21, %v5266_v29  ;;  %v407_v40 = vand.u32 4294901760, %v406_v30  ;;  %v1725_v42 = vand.u32 4294901760, %v1724_v32  ;;  %v5261_v44 = vand.u32 4294901760, %v3950_v34 }
  0x11   :  { %v1563_v41 = vsub.f32 %v3928_v23, %v5264_v31  ;;  %v255_v43 = vsub.f32 %v3934_v25, %v5262_v33  ;;  %v138_v51 = vsel %vm127_vm0, %v113_v37, 0  ;;  %v1456_v52 = vsel %vm127_vm0, %v3034_v38, 0  ;;  %v122_v31 = vld [vmem:[%s3885_s8 + $0x60] sm:$0xff]  ;;  %p3815_p5 = por %p3814_p4, %p3813_p3 }
  0x12   :  { %v246_v49 = vand.u32 4294901760, %v245_v39  ;;  %3296 = vmatprep.subr.mxu0 %v407_v40  ;;  %3452 = vmatprep.subr.mxu1 %v1725_v42  ;;  %v1573_v54 = vsub.f32 %v3950_v34, %v5261_v44  ;;  %v265_v55 = vsub.f32 %v3953_v35, %v5260_v45  ;;  %v1583_v56 = vsub.f32 %v3956_v36, %v5259_v46 }
  0x13   :  { %v1564_v50 = vand.u32 4294901760, %v1563_v41  ;;  %v256_v53 = vand.u32 4294901760, %v255_v43  ;;  %v3986_v58 = vand.u32 4294901760, %v138_v51  ;;  %v3988_v59 = vand.u32 4294901760, %v1456_v52  ;;  %p3816_p6 = pnand %p3815_p5, %p3809_p2 }
  0x14   :  { %3272 = vmatprep.mubr.f32.mxu0 %v246_v49  ;;  %v141_v60 = vsel %vm127_vm0, %v114_v47, 0  ;;  %v1459_v61 = vsel %vm127_vm0, %v3035_v48, 0  ;;  %v1574_v0 = vand.u32 4294901760, %v1573_v54  ;;  %v266_v1 = vand.u32 4294901760, %v265_v55  ;;  %v3038_v54 = vld [vmem:[%s3885_s8 + $0xb8] sm:$0xff] }
  0x15   :  { %3428 = vmatprep.mubr.f32.mxu1 %v1564_v50  ;;  %3273 = vmatmul.mubr.f32.vlgmr.msra.gmra.mrb[0].mxu0 %v256_v53  ;;  %v1584_v4 = vand.u32 4294901760, %v1583_v56  ;;  %v3994_v5 = vand.u32 4294901760, %v141_v60  ;;  %v3997_v6 = vsub.f32 %v138_v51, %v3986_v58  ;;  %v4000_v7 = vsub.f32 %v1456_v52, %v3988_v59  ;;  %v117_v53 = vld [vmem:[%s3885_s8 + $0x38] sm:$0xff] }
  0x16   :  { %3297 = vmatpush3.msra.mxu0 %v407_v40  ;;  %v4002_v8 = vand.u32 4294901760, %v1459_v61  ;;  %v144_v9 = vsel %vm127_vm0, %v115_v57, 0  ;;  %3429 = vmatmul.mubr.f32.vlgmr.msra.gmra.mrb[0].mxu1 %v1574_v0  ;;  %v1462_v18 = vsel %vm127_vm0, %v3036_v62, 0  ;;  %v147_v19 = vsel %vm127_vm0, %v116_v63, 0 }
  0x17   :  { %3275 = vmatprep.mubr.f32.mxu0 %v266_v1  ;;  %v4007_v11 = vsub.f32 %v141_v60, %v3994_v5  ;;  %v4009_v12 = vand.u32 4294901760, %v144_v9  ;;  %3453 = vmatpush3.msra.mxu1 %v1725_v42  ;;  %v5258_v20 = vand.u32 4294901760, %v3997_v6  ;;  %v5256_v30 = vand.u32 4294901760, %v4000_v7  ;;  %v118_v1 = vld [vmem:[%s3885_s8 + $0x40] sm:$0xff] }
  0x18   :  { %3431 = vmatprep.mubr.f32.mxu1 %v1584_v4  ;;  %v4016_v32 = vsub.f32 %v1459_v61, %v4002_v8  ;;  %v4018_v37 = vand.u32 4294901760, %v1462_v18  ;;  %v4024_v40 = vand.u32 4294901760, %v147_v19  ;;  %v1465_v41 = vsel %vm127_vm0, %v3037_v10, 0  ;;  %3322 = vmatprep.subr.mxu0 %v3907_v14  ;;  %v3039_v4 = vld [vmem:[%s3885_s8 + $0xc0] sm:$0xff] }
  0x19   :  { %5339 = vst [vmem:[#allocation9_spill] sm:$0xff] %v4007_v11  ;;  %v5255_v38 = vand.u32 4294901760, %v4007_v11  ;;  %v4022_v39 = vsub.f32 %v144_v9, %v4009_v12  ;;  %3478 = vmatprep.subr.mxu1 %v3912_v16  ;;  %v275_v42 = vsub.f32 %v3997_v6, %v5258_v20  ;;  %v1593_v43 = vsub.f32 %v4000_v7, %v5256_v30  ;;  %v121_v20 = vld [vmem:[%s3885_s8 + $0x58] sm:$0xff] }
  0x1a   :  { %5340 = vst [vmem:[#allocation10_spill] sm:$0xff] %v4016_v32  ;;  %v5253_v47 = vand.u32 4294901760, %v4016_v32  ;;  %v4037_v48 = vsub.f32 %v1462_v18, %v4018_v37  ;;  %v4044_v51 = vsub.f32 %v147_v19, %v4024_v40  ;;  %v4046_v52 = vand.u32 4294901760, %v1465_v41 }
  0x1b   :  { %5341 = vst [vmem:[#allocation11_spill] sm:$0xff] %v4022_v39  ;;  %v285_v49 = vsub.f32 %v4007_v11, %v5255_v38  ;;  %v5252_v50 = vand.u32 4294901760, %v4022_v39  ;;  %v276_v55 = vand.u32 4294901760, %v275_v42  ;;  %v1594_v56 = vand.u32 4294901760, %v1593_v43 }
  0x1c   :  { %5342 = vst [vmem:[#allocation12_spill] sm:$0xff] %v4037_v48  ;;  %5343 = vst [vmem:[#allocation13_spill] sm:$0xff] %v4044_v51  ;;  %v1603_v57 = vsub.f32 %v4016_v32, %v5253_v47  ;;  %v5250_v60 = vand.u32 4294901760, %v4037_v48  ;;  %v5251_v63 = vand.u32 4294901760, %v4044_v51  ;;  %v4059_v0 = vsub.f32 %v1465_v41, %v4046_v52  ;;  %v120_v47 = vld [vmem:[%s3885_s8 + $0x50] sm:$0xff] }
  0x1d   :  { %v286_v61 = vand.u32 4294901760, %v285_v49  ;;  %v295_v62 = vsub.f32 %v4022_v39, %v5252_v50  ;;  %3276 = vmatmul.mubr.f32.gmra.mrb[2].mxu0 %v276_v55  ;;  %3432 = vmatmul.mubr.f32.gmra.mrb[2].mxu1 %v1594_v56  ;;  %v150_v18 = vsel %vm127_vm0, %v117_v53, 0  ;;  %v1468_v19 = vsel %vm127_vm0, %v3038_v54, 0  ;;  %v119_v55 = vld [vmem:[%s3885_s8 + $0x48] sm:$0xff] }
  0x1e   :  { %5344 = vst [vmem:[#allocation14_spill] sm:$0xff] %v4059_v0  ;;  %v1604_v9 = vand.u32 4294901760, %v1603_v57  ;;  %v1613_v10 = vsub.f32 %v4037_v48, %v5250_v60  ;;  %v305_v41 = vsub.f32 %v4044_v51, %v5251_v63  ;;  %v5254_v43 = vand.u32 4294901760, %v4059_v0  ;;  %v3040_v56 = vld [vmem:[%s3885_s8 + $0xc8] sm:$0xff] }
  0x1f   :  { %3278 = vmatprep.mubr.f32.mxu0 %v286_v61  ;;  %v296_v42 = vand.u32 4294901760, %v295_v62  ;;  %v4072_v49 = vand.u32 4294901760, %v150_v18  ;;  %v4076_v60 = vand.u32 4294901760, %v1468_v19  ;;  %v153_v53 = vsel %vm127_vm0, %v118_v1, 0 }
  0x20   :  { %3434 = vmatprep.mubr.f32.mxu1 %v1604_v9  ;;  %v1614_v57 = vand.u32 4294901760, %v1613_v10  ;;  %v1471_v54 = vsel %vm127_vm0, %v3039_v4, 0  ;;  %v306_v61 = vand.u32 4294901760, %v305_v41  ;;  %v1623_v62 = vsub.f32 %v4059_v0, %v5254_v43 }
  0x21   :  { %v4084_v63 = vsub.f32 %v150_v18, %v4072_v49  ;;  %v4086_v50 = vand.u32 4294901760, %v153_v53  ;;  %3279 = vmatmul.mubr.f32.gmra.mrb[4].mxu0 %v296_v42  ;;  %v4090_v9 = vsub.f32 %v1468_v19, %v4076_v60  ;;  %v4092_v1 = vand.u32 4294901760, %v1471_v54  ;;  %v3041_v42 = vld [vmem:[%s3885_s8 + $0xd0] sm:$0xff] }
  0x22   :  { %3435 = vmatmul.mubr.f32.gmra.mrb[4].mxu1 %v1614_v57  ;;  %v156_v4 = vsel %vm127_vm0, %v119_v55, 0  ;;  %v1474_v10 = vsel %vm127_vm0, %v3040_v56, 0  ;;  %3281 = vmatprep.mubr.f32.mxu0 %v306_v61  ;;  %v1624_v41 = vand.u32 4294901760, %v1623_v62  ;;  %v159_v55 = vsel %vm127_vm0, %v120_v47, 0 }
  0x23   :  { %5345 = vst [vmem:[#allocation15_spill] sm:$0xff] %v4084_v63  ;;  %5346 = vst [vmem:[#allocation16_spill] sm:$0xff] %v4090_v9  ;;  %v5257_v43 = vand.u32 4294901760, %v4084_v63  ;;  %v4098_v18 = vsub.f32 %v153_v53, %v4086_v50  ;;  %v4100_v38 = vand.u32 4294901760, %v156_v4  ;;  %v5263_v19 = vand.u32 4294901760, %v4090_v9 }
  0x24   :  { %v4105_v57 = vsub.f32 %v1471_v54, %v4092_v1  ;;  %v4107_v30 = vand.u32 4294901760, %v1474_v10  ;;  %3437 = vmatprep.mubr.f32.mxu1 %v1624_v41  ;;  %v4117_v62 = vand.u32 4294901760, %v159_v55  ;;  %v162_v29 = vsel %vm127_vm0, %v121_v20, 0 }
  0x25   :  { %5347 = vst [vmem:[#allocation17_spill] sm:$0xff] %v4098_v18  ;;  %v315_v56 = vsub.f32 %v4084_v63, %v5257_v43  ;;  %v5265_v53 = vand.u32 4294901760, %v4098_v18  ;;  %v4115_v61 = vsub.f32 %v156_v4, %v4100_v38  ;;  %v1633_v54 = vsub.f32 %v4090_v9, %v5263_v19  ;;  %v123_v9 = vld [vmem:[%s3885_s8 + $0x68] sm:$0xff] }
  0x26   :  { %5348 = vst [vmem:[#allocation18_spill] sm:$0xff] %v4105_v57  ;;  %v5269_v47 = vand.u32 4294901760, %v4105_v57  ;;  %v4124_v41 = vsub.f32 %v1474_v10, %v4107_v30  ;;  %v1477_v43 = vsel %vm127_vm0, %v3041_v42, 0  ;;  %v4133_v44 = vsub.f32 %v159_v55, %v4117_v62  ;;  %v3044_v63 = vld [vmem:[%s3885_s8 + $0xe8] sm:$0xff] }
  0x27   :  { %5349 = vst [vmem:[#allocation19_spill] sm:$0xff] %v4115_v61  ;;  %v316_v46 = vand.u32 4294901760, %v315_v56  ;;  %v325_v4 = vsub.f32 %v4098_v18, %v5265_v53  ;;  %v5274_v45 = vand.u32 4294901760, %v4115_v61  ;;  %v1634_v33 = vand.u32 4294901760, %v1633_v54  ;;  %v3042_v56 = vld [vmem:[%s3885_s8 + $0xd8] sm:$0xff] }
  0x28   :  { %5350 = vst [vmem:[#allocation20_spill] sm:$0xff] %v4124_v41  ;;  %5351 = vst [vmem:[#allocation21_spill] sm:$0xff] %v4133_v44  ;;  %v1643_v10 = vsub.f32 %v4105_v57, %v5269_v47  ;;  %v5275_v42 = vand.u32 4294901760, %v4124_v41  ;;  %v4139_v19 = vand.u32 4294901760, %v1477_v43  ;;  %v5284_v54 = vand.u32 4294901760, %v4133_v44 }
  0x29   :  { %3282 = vmatmul.mubr.f32.gmra.mrb[6].mxu0 %v316_v46  ;;  %v326_v53 = vand.u32 4294901760, %v325_v4  ;;  %v335_v55 = vsub.f32 %v4115_v61, %v5274_v45  ;;  %3438 = vmatmul.mubr.f32.gmra.mrb[6].mxu1 %v1634_v33  ;;  %v4154_v46 = vand.u32 4294901760, %v162_v29  ;;  %v3043_v4 = vld [vmem:[%s3885_s8 + $0xe0] sm:$0xff]  ;;  %v1480_v20 = vsel %vm127_vm0, %v3042_v56, 0 }
  0x2a   :  { %v1644_v18 = vand.u32 4294901760, %v1643_v10  ;;  %v1653_v47 = vsub.f32 %v4124_v41, %v5275_v42  ;;  %v4152_v57 = vsub.f32 %v1477_v43, %v4139_v19  ;;  %v345_v33 = vsub.f32 %v4133_v44, %v5284_v54 }
  0x2b   :  { %5353 = vst [vmem:[#allocation23_spill] sm:$0xff] %v4154_v46  ;;  %3284 = vmatprep.mubr.f32.mxu0 %v326_v53  ;;  %v336_v45 = vand.u32 4294901760, %v335_v55  ;;  %v165_v10 = vsel %vm127_vm0, %v122_v31, 0  ;;  %v4165_v43 = vsub.f32 %v162_v29, %v4154_v46  ;;  %v4167_v61 = vand.u32 4294901760, %v1480_v20  ;;  %v124_v53 = vld [vmem:[%s3885_s8 + $0x70] sm:$0xff] }
  0x2c   :  { %5352 = vst [vmem:[#allocation22_spill] sm:$0xff] %v4152_v57  ;;  %3440 = vmatprep.mubr.f32.mxu1 %v1644_v18  ;;  %v1654_v42 = vand.u32 4294901760, %v1653_v47  ;;  %v5285_v41 = vand.u32 4294901760, %v4152_v57  ;;  %v346_v55 = vand.u32 4294901760, %v345_v33  ;;  %v4171_v0 = vand.u32 4294901760, %v165_v10  ;;  %v3045_v33 = vld [vmem:[%s3885_s8 + $0xf0] sm:$0xff] }
  0x2d   :  { %5354 = vst [vmem:[#allocation24_spill] sm:$0xff] %v4165_v43  ;;  %5355 = vst [vmem:[#allocation25_spill] sm:$0xff] %v4167_v61  ;;  %3285 = vmatmul.mubr.f32.gmra.mrb[8].mxu0 %v336_v45  ;;  %v1483_v56 = vsel %vm127_vm0, %v3043_v4, 0  ;;  %v168_v31 = vsel %vm127_vm0, %v123_v9, 0  ;;  %v5292_v29 = vand.u32 4294901760, %v4165_v43  ;;  %v4180_v47 = vsub.f32 %v1480_v20, %v4167_v61 }
  0x2e   :  { %5356 = vst [vmem:[#allocation26_spill] sm:$0xff] %v4171_v0  ;;  %3441 = vmatmul.mubr.f32.gmra.mrb[8].mxu1 %v1654_v42  ;;  %v1663_v18 = vsub.f32 %v4152_v57, %v5285_v41  ;;  %v4182_v54 = vand.u32 4294901760, %v1483_v56  ;;  %3287 = vmatprep.mubr.f32.mxu0 %v346_v55  ;;  %v4185_v45 = vsub.f32 %v165_v10, %v4171_v0  ;;  %v4187_v4 = vand.u32 4294901760, %v168_v31 }
  0x2f   :  { %5357 = vst [vmem:[#allocation27_spill] sm:$0xff] %v4180_v47  ;;  %v1486_v9 = vsel %vm127_vm0, %v3044_v63, 0  ;;  %v171_v42 = vsel %vm127_vm0, %v124_v53, 0  ;;  %v355_v20 = vsub.f32 %v4165_v43, %v5292_v29  ;;  %v5301_v57 = vand.u32 4294901760, %v4180_v47 }
  0x30   :  { %5358 = vst [vmem:[#allocation28_spill] sm:$0xff] %v4182_v54  ;;  %5359 = vst [vmem:[#allocation29_spill] sm:$0xff] %v4185_v45  ;;  %v1664_v41 = vand.u32 4294901760, %v1663_v18  ;;  %v4197_v55 = vsub.f32 %v1483_v56, %v4182_v54  ;;  %v5304_v10 = vand.u32 4294901760, %v4185_v45  ;;  %v4201_v44 = vsub.f32 %v168_v31, %v4187_v4  ;;  %v125_v18 = vld [vmem:[%s3885_s8 + $0x78] sm:$0xff] }
  0x31   :  { %5360 = vst [vmem:[#allocation30_spill] sm:$0xff] %v4187_v4  ;;  %v4203_v63 = vand.u32 4294901760, %v1486_v9  ;;  %v4205_v53 = vand.u32 4294901760, %v171_v42  ;;  %v356_v51 = vand.u32 4294901760, %v355_v20  ;;  %v1673_v29 = vsub.f32 %v4180_v47, %v5301_v57  ;;  %v3046_v20 = vld [vmem:[%s3885_s8 + $0xf8] sm:$0xff] }
  0x32   :  { %5361 = vst [vmem:[#allocation31_spill] sm:$0xff] %v4201_v44  ;;  %3443 = vmatprep.mubr.f32.mxu1 %v1664_v41  ;;  %v5309_v43 = vand.u32 4294901760, %v4197_v55  ;;  %v1489_v56 = vsel %vm127_vm0, %v3045_v33, 0  ;;  %v365_v31 = vsub.f32 %v4185_v45, %v5304_v10  ;;  %v5310_v48 = vand.u32 4294901760, %v4201_v44 }
  0x33   :  { %5362 = vst [vmem:[#allocation32_spill] sm:$0xff] %v4203_v63  ;;  %5363 = vst [vmem:[#allocation33_spill] sm:$0xff] %v4205_v53  ;;  %v4218_v39 = vsub.f32 %v1486_v9, %v4203_v63  ;;  %v4221_v41 = vsub.f32 %v171_v42, %v4205_v53  ;;  %3288 = vmatmul.mubr.f32.gmra.mrb[10].mxu0 %v356_v51  ;;  %v1674_v32 = vand.u32 4294901760, %v1673_v29  ;;  %v4227_v33 = vand.u32 4294901760, %v1489_v56 }
  0x34   :  { %v1683_v57 = vsub.f32 %v4197_v55, %v5309_v43  ;;  %v174_v47 = vsel %vm127_vm0, %v125_v18, 0  ;;  %v366_v10 = vand.u32 4294901760, %v365_v31  ;;  %v375_v9 = vsub.f32 %v4201_v44, %v5310_v48 }
  0x35   :  { %5364 = vst [vmem:[#allocation34_spill] sm:$0xff] %v4227_v33  ;;  %v5314_v45 = vand.u32 4294901760, %v4218_v39  ;;  %v5313_v42 = vand.u32 4294901760, %v4221_v41  ;;  %3444 = vmatmul.mubr.f32.gmra.mrb[10].mxu1 %v1674_v32  ;;  %v4236_v29 = vsub.f32 %v1489_v56, %v4227_v33  ;;  %v4238_v11 = vand.u32 4294901760, %v174_v47 }
  0x36   :  { %v1684_v51 = vand.u32 4294901760, %v1683_v57  ;;  %v1492_v43 = vsel %vm127_vm0, %v3046_v20, 0  ;;  %3290 = vmatprep.mubr.f32.mxu0 %v366_v10  ;;  %v376_v18 = vand.u32 4294901760, %v375_v9 }
  0x37   :  { %5365 = vst [vmem:[#allocation35_spill] sm:$0xff] %v4238_v11  ;;  %v1693_v31 = vsub.f32 %v4218_v39, %v5314_v45  ;;  %v385_v48 = vsub.f32 %v4221_v41, %v5313_v42  ;;  %v4247_v44 = vand.u32 4294901760, %v1492_v43  ;;  %v5317_v32 = vand.u32 4294901760, %v4236_v29 }
  0x38   :  { %3446 = vmatprep.mubr.f32.mxu1 %v1684_v51  ;;  %v4251_v57 = vsub.f32 %v174_v47, %v4238_v11  ;;  %3291 = vmatmul.mubr.f32.gmra.mrb[12].mxu0 %v376_v18 }
  0x39   :  { %5366 = vst [vmem:[#allocation36_spill] sm:$0xff] %v4247_v44  ;;  %v1694_v56 = vand.u32 4294901760, %v1693_v31  ;;  %v386_v10 = vand.u32 4294901760, %v385_v48  ;;  %v4254_v20 = vsub.f32 %v1492_v43, %v4247_v44  ;;  %v1703_v9 = vsub.f32 %v4236_v29, %v5317_v32  ;;  %v5370_v31 = vld [vmem:[#allocation12_spill] sm:$0xff]  ;;  %v5380_v32 = vld [vmem:[#allocation22_spill] sm:$0xff] }
  0x3a   :  { %v5316_v42 = vand.u32 4294901760, %v4251_v57 }
  0x3b   :  { %3447 = vmatmul.mubr.f32.gmra.mrb[12].mxu1 %v1694_v56  ;;  %3293 = vmatprep.mubr.f32.mxu0 %v386_v10  ;;  %v5315_v51 = vand.u32 4294901760, %v4254_v20  ;;  %v1704_v45 = vand.u32 4294901760, %v1703_v9  ;;  %v5371_v56 = vld [vmem:[#allocation13_spill] sm:$0xff]  ;;  %v5372_v10 = vld [vmem:[#allocation14_spill] sm:$0xff]  ;;  %v5373_v9 = vld [vmem:[#allocation15_spill] sm:$0xff] }
  0x3c   :  { %v395_v47 = vsub.f32 %v4251_v57, %v5316_v42  ;;  %v5379_v42 = vld [vmem:[#allocation21_spill] sm:$0xff] }
  0x3d   :  { %v1713_v48 = vsub.f32 %v4254_v20, %v5315_v51  ;;  %3449 = vmatprep.mubr.f32.mxu1 %v1704_v45  ;;  %v5369_v45 = vld [vmem:[#allocation11_spill] sm:$0xff]  ;;  %v5378_v51 = vld [vmem:[#allocation20_spill] sm:$0xff] }
  0x3e   :  { %v396_v43 = vand.u32 4294901760, %v395_v47  ;;  %v5374_v47 = vld [vmem:[#allocation16_spill] sm:$0xff] }
  0x3f   :  { %v1714_v18 = vand.u32 4294901760, %v1713_v48  ;;  %v5375_v48 = vld [vmem:[#allocation17_spill] sm:$0xff] }
  0x40   :  { %3294 = vmatmul.mubr.f32.gmra.mrb[14].mxu0 %v396_v43  ;;  %v5376_v43 = vld [vmem:[#allocation18_spill] sm:$0xff] }
  0x41   :  { %3450 = vmatmul.mubr.f32.gmra.mrb[14].mxu1 %v1714_v18  ;;  %3298 = vmatprep.mubr.f32.mxu0 %v3904_v13  ;;  %v5377_v18 = vld [vmem:[#allocation19_spill] sm:$0xff] }
  0x42   :  { %3454 = vmatprep.mubr.f32.mxu1 %v3909_v15 }
  0x44   :  { %3299 = vmatmul.mubr.f32.vlgmr.msra.gmra.mrb[0].mxu0 %v3916_v17 }
  0x45   :  { %3323 = vmatpush3.msra.mxu0 %v3907_v14  ;;  %3455 = vmatmul.mubr.f32.vlgmr.msra.gmra.mrb[0].mxu1 %v3936_v26  ;;  %v5367_v14 = vld [vmem:[#allocation9_spill] sm:$0xff] }
  0x46   :  { %3479 = vmatpush3.msra.mxu1 %v3912_v16  ;;  %3301 = vmatprep.mubr.f32.mxu0 %v3938_v27  ;;  %v5368_v16 = vld [vmem:[#allocation10_spill] sm:$0xff] }
  0x47   :  { %3457 = vmatprep.mubr.f32.mxu1 %v3940_v28  ;;  %3348 = vmatprep.subr.mxu0 %v3889_v2 }
  0x48   :  { %3302 = vmatmul.mubr.f32.gmra.mrb[2].mxu0 %v3986_v58  ;;  %3504 = vmatprep.subr.mxu1 %v3891_v3 }
  0x49   :  { %3458 = vmatmul.mubr.f32.gmra.mrb[2].mxu1 %v3988_v59  ;;  %3304 = vmatprep.mubr.f32.mxu0 %v3994_v5 }
  0x4a   :  { %3460 = vmatprep.mubr.f32.mxu1 %v4002_v8 }
  0x4c   :  { %3305 = vmatmul.mubr.f32.gmra.mrb[4].mxu0 %v4009_v12 }
  0x4d   :  { %3461 = vmatmul.mubr.f32.gmra.mrb[4].mxu1 %v4018_v37  ;;  %3307 = vmatprep.mubr.f32.mxu0 %v4024_v40 }
  0x4e   :  { %3463 = vmatprep.mubr.f32.mxu1 %v4046_v52 }
  0x50   :  { %3308 = vmatmul.mubr.f32.gmra.mrb[6].mxu0 %v4072_v49 }
  0x51   :  { %3464 = vmatmul.mubr.f32.gmra.mrb[6].mxu1 %v4076_v60  ;;  %3310 = vmatprep.mubr.f32.mxu0 %v4086_v50 }
  0x52   :  { %3466 = vmatprep.mubr.f32.mxu1 %v4092_v1 }
  0x54   :  { %3311 = vmatmul.mubr.f32.gmra.mrb[8].mxu0 %v4100_v38 }
  0x55   :  { %3467 = vmatmul.mubr.f32.gmra.mrb[8].mxu1 %v4107_v30  ;;  %3313 = vmatprep.mubr.f32.mxu0 %v4117_v62 }
  0x56   :  { %3469 = vmatprep.mubr.f32.mxu1 %v4139_v19 }
  0x58   :  { %3314 = vmatmul.mubr.f32.gmra.mrb[10].mxu0 %v4154_v46  ;;  %v5390_v46 = vand.u32 4294901760, %v3956_v36 }
  0x59   :  { %3470 = vmatmul.mubr.f32.gmra.mrb[10].mxu1 %v4167_v61  ;;  %3316 = vmatprep.mubr.f32.mxu0 %v4171_v0  ;;  %v5388_v0 = vand.u32 4294901760, %v3950_v34  ;;  %v5389_v61 = vand.u32 4294901760, %v3953_v35 }
  0x5a   :  { %3472 = vmatprep.mubr.f32.mxu1 %v4182_v54  ;;  %v5387_v54 = vand.u32 4294901760, %v3934_v25 }
  0x5c   :  { %3317 = vmatmul.mubr.f32.gmra.mrb[12].mxu0 %v4187_v4  ;;  %v5386_v4 = vand.u32 4294901760, %v3928_v23 }
  0x5d   :  { %3473 = vmatmul.mubr.f32.gmra.mrb[12].mxu1 %v4203_v63  ;;  %3319 = vmatprep.mubr.f32.mxu0 %v4205_v53  ;;  %v5384_v53 = vld [vmem:[#allocation31_spill] sm:$0xff]  ;;  %v5385_v63 = vand.u32 4294901760, %v3922_v21 }
  0x5e   :  { %3475 = vmatprep.mubr.f32.mxu1 %v4227_v33  ;;  %v5383_v33 = vld [vmem:[#allocation29_spill] sm:$0xff] }
  0x60   :  { %3320 = vmatmul.mubr.f32.gmra.mrb[14].mxu0 %v4238_v11  ;;  %v5382_v11 = vld [vmem:[#allocation27_spill] sm:$0xff] }
  0x61   :  { %3476 = vmatmul.mubr.f32.gmra.mrb[14].mxu1 %v4247_v44  ;;  %3324 = vmatprep.mubr.f32.mxu0 %v3922_v21  ;;  %v5381_v44 = vld [vmem:[#allocation24_spill] sm:$0xff]  ;;  %v5391_v21 = vand.u32 4294901760, %v3997_v6 }
  0x62   :  { %3480 = vmatprep.mubr.f32.mxu1 %v3928_v23  ;;  %v5393_v23 = vand.u32 4294901760, %v5367_v14 }
  0x64   :  { %3325 = vmatmul.mubr.f32.vlgmr.msra.gmra.mrb[0].mxu0 %v3934_v25  ;;  %v5395_v25 = vand.u32 4294901760, %v5369_v45 }
  0x65   :  { %3349 = vmatpush3.msra.mxu0 %v3889_v2  ;;  %3481 = vmatmul.mubr.f32.vlgmr.msra.gmra.mrb[0].mxu1 %v3950_v34  ;;  %v5396_v34 = vand.u32 4294901760, %v5370_v31 }
  0x66   :  { %3505 = vmatpush3.msra.mxu1 %v3891_v3  ;;  %3327 = vmatprep.mubr.f32.mxu0 %v3953_v35  ;;  %v5397_v35 = vand.u32 4294901760, %v5371_v56 }
  0x67   :  { %3483 = vmatprep.mubr.f32.mxu1 %v3956_v36  ;;  %3374 = vmatprep.subr.mxu0 %v3925_v22  ;;  %v5398_v36 = vand.u32 4294901760, %v5372_v10 }
  0x68   :  { %3328 = vmatmul.mubr.f32.gmra.mrb[2].mxu0 %v3997_v6  ;;  %3530 = vmatprep.subr.mxu1 %v3931_v24  ;;  %v5399_v6 = vand.u32 4294901760, %v5373_v9 }
  0x69   :  { %3484 = vmatmul.mubr.f32.gmra.mrb[2].mxu1 %v4000_v7  ;;  %3330 = vmatprep.mubr.f32.mxu0 %v5367_v14  ;;  %v5407_v14 = vand.u32 4294901760, %v5381_v44 }
  0x6a   :  { %3486 = vmatprep.mubr.f32.mxu1 %v5368_v16 }
  0x6c   :  { %3331 = vmatmul.mubr.f32.gmra.mrb[4].mxu0 %v5369_v45  ;;  %v5409_v45 = vand.u32 4294901760, %v5383_v33 }
  0x6d   :  { %3487 = vmatmul.mubr.f32.gmra.mrb[4].mxu1 %v5370_v31  ;;  %3333 = vmatprep.mubr.f32.mxu0 %v5371_v56  ;;  %v5410_v31 = vand.u32 4294901760, %v4197_v55  ;;  %v5426_v56 = vld [vmem:[#allocation36_spill] sm:$0xff] }
  0x6e   :  { %3489 = vmatprep.mubr.f32.mxu1 %v5372_v10 }
  0x70   :  { %3334 = vmatmul.mubr.f32.gmra.mrb[6].mxu0 %v5373_v9 }
  0x71   :  { %3490 = vmatmul.mubr.f32.gmra.mrb[6].mxu1 %v5374_v47  ;;  %3336 = vmatprep.mubr.f32.mxu0 %v5375_v48 }
  0x72   :  { %3492 = vmatprep.mubr.f32.mxu1 %v5376_v43 }
  0x74   :  { %3337 = vmatmul.mubr.f32.gmra.mrb[8].mxu0 %v5377_v18 }
  0x75   :  { %3493 = vmatmul.mubr.f32.gmra.mrb[8].mxu1 %v5378_v51  ;;  %3339 = vmatprep.mubr.f32.mxu0 %v5379_v42 }
  0x76   :  { %3495 = vmatprep.mubr.f32.mxu1 %v5380_v32 }
  0x78   :  { %3340 = vmatmul.mubr.f32.gmra.mrb[10].mxu0 %v5381_v44  ;;  %v5414_v44 = vand.u32 4294901760, %v4236_v29 }
  0x79   :  { %3496 = vmatmul.mubr.f32.gmra.mrb[10].mxu1 %v5382_v11  ;;  %3342 = vmatprep.mubr.f32.mxu0 %v5383_v33  ;;  %v5416_v33 = vand.u32 4294901760, %v4254_v20 }
  0x7a   :  { %3498 = vmatprep.mubr.f32.mxu1 %v4197_v55  ;;  %v5420_v55 = vld [vmem:[#allocation28_spill] sm:$0xff] }
  0x7c   :  { %3343 = vmatmul.mubr.f32.gmra.mrb[12].mxu0 %v5384_v53 }
  0x7d   :  { %3499 = vmatmul.mubr.f32.gmra.mrb[12].mxu1 %v4218_v39  ;;  %3345 = vmatprep.mubr.f32.mxu0 %v4221_v41 }
  0x7e   :  { %3501 = vmatprep.mubr.f32.mxu1 %v4236_v29  ;;  %v5423_v29 = vld [vmem:[#allocation33_spill] sm:$0xff] }
  0x80   :  { %3346 = vmatmul.mubr.f32.gmra.mrb[14].mxu0 %v4251_v57 }
  0x81   :  { %3502 = vmatmul.mubr.f32.gmra.mrb[14].mxu1 %v4254_v20  ;;  %3350 = vmatprep.mubr.f32.mxu0 %v5385_v63  ;;  %v5406_v63 = vand.u32 4294901760, %v5380_v32  ;;  %v5413_v32 = vand.u32 4294901760, %v4221_v41  ;;  %v5422_v41 = vld [vmem:[#allocation32_spill] sm:$0xff]  ;;  %v5425_v20 = vld [vmem:[#allocation35_spill] sm:$0xff] }
  0x82   :  { %3506 = vmatprep.mubr.f32.mxu1 %v5386_v4  ;;  %v5405_v4 = vand.u32 4294901760, %v5379_v42  ;;  %v5412_v42 = vand.u32 4294901760, %v4218_v39  ;;  %v5419_v39 = vld [vmem:[#allocation26_spill] sm:$0xff] }
  0x84   :  { %3351 = vmatmul.mubr.f32.vlgmr.msra.gmra.mrb[0].mxu0 %v5387_v54  ;;  %v5403_v54 = vand.u32 4294901760, %v5377_v18 }
  0x85   :  { %3375 = vmatpush3.msra.mxu0 %v3925_v22  ;;  %3507 = vmatmul.mubr.f32.vlgmr.msra.gmra.mrb[0].mxu1 %v5388_v0  ;;  %v5392_v22 = vand.u32 4294901760, %v4000_v7  ;;  %v5400_v7 = vand.u32 4294901760, %v5374_v47  ;;  %v5401_v0 = vand.u32 4294901760, %v5375_v48 }
  0x86   :  { %3531 = vmatpush3.msra.mxu1 %v3931_v24  ;;  %3353 = vmatprep.mubr.f32.mxu0 %v5389_v61  ;;  %v5394_v24 = vand.u32 4294901760, %v5368_v16  ;;  %v5402_v61 = vand.u32 4294901760, %v5376_v43  ;;  %v5408_v16 = vand.u32 4294901760, %v5382_v11  ;;  %v5415_v11 = vand.u32 4294901760, %v4251_v57  ;;  %v5424_v57 = vld [vmem:[#allocation34_spill] sm:$0xff] }
  0x87   :  { %3509 = vmatprep.mubr.f32.mxu1 %v5390_v46  ;;  %3400 = vmatprep.subr.mxu0 %v3889_v2  ;;  %v5404_v46 = vand.u32 4294901760, %v5378_v51  ;;  %v5411_v51 = vand.u32 4294901760, %v5384_v53  ;;  %v5421_v53 = vld [vmem:[#allocation30_spill] sm:$0xff] }
  0x88   :  { %3354 = vmatmul.mubr.f32.gmra.mrb[2].mxu0 %v5391_v21  ;;  %3556 = vmatprep.subr.mxu1 %v3891_v3 }
  0x89   :  { %3510 = vmatmul.mubr.f32.gmra.mrb[2].mxu1 %v5392_v22  ;;  %3356 = vmatprep.mubr.f32.mxu0 %v5393_v23 }
  0x8a   :  { %3512 = vmatprep.mubr.f32.mxu1 %v5394_v24 }
  0x8c   :  { %3357 = vmatmul.mubr.f32.gmra.mrb[4].mxu0 %v5395_v25 }
  0x8d   :  { %3513 = vmatmul.mubr.f32.gmra.mrb[4].mxu1 %v5396_v34  ;;  %3359 = vmatprep.mubr.f32.mxu0 %v5397_v35 }
  0x8e   :  { %3515 = vmatprep.mubr.f32.mxu1 %v5398_v36 }
  0x90   :  { %3360 = vmatmul.mubr.f32.gmra.mrb[6].mxu0 %v5399_v6 }
  0x91   :  { %3516 = vmatmul.mubr.f32.gmra.mrb[6].mxu1 %v5400_v7  ;;  %3362 = vmatprep.mubr.f32.mxu0 %v5401_v0 }
  0x92   :  { %3518 = vmatprep.mubr.f32.mxu1 %v5402_v61 }
  0x94   :  { %3363 = vmatmul.mubr.f32.gmra.mrb[8].mxu0 %v5403_v54 }
  0x95   :  { %3519 = vmatmul.mubr.f32.gmra.mrb[8].mxu1 %v5404_v46  ;;  %3365 = vmatprep.mubr.f32.mxu0 %v5405_v4 }
  0x96   :  { %3521 = vmatprep.mubr.f32.mxu1 %v5406_v63 }
  0x98   :  { %3366 = vmatmul.mubr.f32.gmra.mrb[10].mxu0 %v5407_v14 }
  0x99   :  { %3522 = vmatmul.mubr.f32.gmra.mrb[10].mxu1 %v5408_v16  ;;  %3368 = vmatprep.mubr.f32.mxu0 %v5409_v45 }
  0x9a   :  { %3524 = vmatprep.mubr.f32.mxu1 %v5410_v31 }
  0x9c   :  { %3369 = vmatmul.mubr.f32.gmra.mrb[12].mxu0 %v5411_v51 }
  0x9d   :  { %3525 = vmatmul.mubr.f32.gmra.mrb[12].mxu1 %v5412_v42  ;;  %3371 = vmatprep.mubr.f32.mxu0 %v5413_v32 }
  0x9e   :  { %3527 = vmatprep.mubr.f32.mxu1 %v5414_v44 }
  0xa0   :  { %3372 = vmatmul.mubr.f32.gmra.mrb[14].mxu0 %v5415_v11 }
  0xa1   :  { %3528 = vmatmul.mubr.f32.gmra.mrb[14].mxu1 %v5416_v33  ;;  %3376 = vmatprep.mubr.f32.mxu0 %v3904_v13 }
  0xa2   :  { %3532 = vmatprep.mubr.f32.mxu1 %v3909_v15 }
  0xa4   :  { %3377 = vmatmul.mubr.f32.vlgmr.msra.gmra.mrb[0].mxu0 %v3916_v17 }
  0xa5   :  { %3401 = vmatpush3.msra.mxu0 %v3889_v2  ;;  %3533 = vmatmul.mubr.f32.vlgmr.msra.gmra.mrb[0].mxu1 %v3936_v26  ;;  %v5417_v2 = vld [vmem:[#allocation23_spill] sm:$0xff] }
  0xa6   :  { %3557 = vmatpush3.msra.mxu1 %v3891_v3  ;;  %3379 = vmatprep.mubr.f32.mxu0 %v3938_v27  ;;  %v5418_v3 = vld [vmem:[#allocation25_spill] sm:$0xff] }
  0xa7   :  { %3535 = vmatprep.mubr.f32.mxu1 %v3940_v28 }
  0xa8   :  { %3380 = vmatmul.mubr.f32.gmra.mrb[2].mxu0 %v3986_v58 }
  0xa9   :  { %3536 = vmatmul.mubr.f32.gmra.mrb[2].mxu1 %v3988_v59  ;;  %3382 = vmatprep.mubr.f32.mxu0 %v3994_v5 }
  0xaa   :  { %3538 = vmatprep.mubr.f32.mxu1 %v4002_v8 }
  0xac   :  { %3383 = vmatmul.mubr.f32.gmra.mrb[4].mxu0 %v4009_v12 }
  0xad   :  { %3539 = vmatmul.mubr.f32.gmra.mrb[4].mxu1 %v4018_v37  ;;  %3385 = vmatprep.mubr.f32.mxu0 %v4024_v40 }
  0xae   :  { %3541 = vmatprep.mubr.f32.mxu1 %v4046_v52 }
  0xb0   :  { %3386 = vmatmul.mubr.f32.gmra.mrb[6].mxu0 %v4072_v49 }
  0xb1   :  { %3542 = vmatmul.mubr.f32.gmra.mrb[6].mxu1 %v4076_v60  ;;  %3388 = vmatprep.mubr.f32.mxu0 %v4086_v50 }
  0xb2   :  { %3544 = vmatprep.mubr.f32.mxu1 %v4092_v1 }
  0xb4   :  { %3389 = vmatmul.mubr.f32.gmra.mrb[8].mxu0 %v4100_v38 }
  0xb5   :  { %3545 = vmatmul.mubr.f32.gmra.mrb[8].mxu1 %v4107_v30  ;;  %3391 = vmatprep.mubr.f32.mxu0 %v4117_v62 }
  0xb6   :  { %3547 = vmatprep.mubr.f32.mxu1 %v4139_v19 }
  0xb8   :  { %3392 = vmatmul.mubr.f32.gmra.mrb[10].mxu0 %v5417_v2 }
  0xb9   :  { %3548 = vmatmul.mubr.f32.gmra.mrb[10].mxu1 %v5418_v3  ;;  %3394 = vmatprep.mubr.f32.mxu0 %v5419_v39 }
  0xba   :  { %3550 = vmatprep.mubr.f32.mxu1 %v5420_v55 }
  0xbc   :  { %3395 = vmatmul.mubr.f32.gmra.mrb[12].mxu0 %v5421_v53 }
  0xbd   :  { %3551 = vmatmul.mubr.f32.gmra.mrb[12].mxu1 %v5422_v41  ;;  %3397 = vmatprep.mubr.f32.mxu0 %v5423_v29 }
  0xbe   :  { %3553 = vmatprep.mubr.f32.mxu1 %v5424_v57 }
  0xc0   :  { %3398 = vmatmul.mubr.f32.gmra.mrb[14].mxu0 %v5425_v20 }
  0xc1   :  { %3554 = vmatmul.mubr.f32.gmra.mrb[14].mxu1 %v5426_v56  ;;  %3402 = vmatprep.mubr.f32.mxu0 %v3904_v13  ;;  %v2840_v13 = vlaneseq }
  0xc2   :  { %3558 = vmatprep.mubr.f32.mxu1 %v3909_v15 }
  0xc3   :  { %v4473_v15 = vshrl.u32 %v2840_v13, 7 }
  0xc4   :  { %3403 = vmatmul.mubr.f32.vlgmr.msra.gmra.mrb[0].mxu0 %v3916_v17 }
  0xc5   :  { %3559 = vmatmul.mubr.f32.vlgmr.msra.gmra.mrb[0].mxu1 %v3936_v26  ;;  %3405 = vmatprep.mubr.f32.mxu0 %v3938_v27  ;;  %v2842_v17 = vadd.s32 8, %v4473_v15  ;;  %v2875_v26 = vand.u32 127, %v2840_v13  ;;  %v4482_v27 = vstv %s3048_s10  ;;  %v4516_v48 = vadd.s32 24, %v4473_v15 }
  0xc6   :  { %3561 = vmatprep.mubr.f32.mxu1 %v3940_v28  ;;  %v2876_v28 = vstv %s3049_s13  ;;  %v4527_v23 = vadd.s32 40, %v4473_v15  ;;  %v4533_v34 = vadd.s32 32, %v4473_v15  ;;  %v4536_v35 = vadd.s32 56, %v4473_v15 }
  0xc7   :  { %v4545_v7 = vadd.s32 48, %v4473_v15 }
  0xc8   :  { %3406 = vmatmul.mubr.f32.gmra.mrb[2].mxu0 %v3986_v58  ;;  %v2859_v58 = vadd.s32 %v4482_v27, %v2842_v17 }
  0xc9   :  { %3562 = vmatmul.mubr.f32.gmra.mrb[2].mxu1 %v3988_v59  ;;  %3408 = vmatprep.mubr.f32.mxu0 %v3994_v5  ;;  %v4485_v59 = vadd.s32 %v2876_v28, %v2875_v26  ;;  %v2858_v5 = vadd.s32 %v4482_v27, %v4473_v15  ;;  %v94_v26 = vld [vmem:[%s4558_s15] sm:$0xff] }
  0xca   :  { %3564 = vmatprep.mubr.f32.mxu1 %v4002_v8 }
  0xcb   :  { %vm2879_vm1 = vcmp.lt.s32.totalorder %v2859_v58, %v4485_v59  ;;  %vm5338_vm2 = vcmp.lt.s32.totalorder %v4485_v59, 16  ;;  %vm2878_vm3 = vcmp.lt.s32.totalorder %v2858_v5, %v4485_v59 }
  0xcc   :  { %3409 = vmatmul.mubr.f32.gmra.mrb[4].mxu0 %v4009_v12  ;;  %vm2896_vm4 = vmand %vm2879_vm1, %vm5338_vm2 }
  0xcd   :  { %3565 = vmatmul.mubr.f32.gmra.mrb[4].mxu1 %v4018_v37  ;;  %3411 = vmatprep.mubr.f32.mxu0 %v4024_v40  ;;  %vm2895_vm5 = vmand %vm2878_vm3, %vm5338_vm2 }
  0xce   :  { %3567 = vmatprep.mubr.f32.mxu1 %v4046_v52  ;;  %v2843_v52 = vadd.s32 16, %v4473_v15 }
  0xd0   :  { %3412 = vmatmul.mubr.f32.gmra.mrb[6].mxu0 %v4072_v49  ;;  %v3832_v49 = vmov 0.0   ;;  %v4524_v22 = vadd.s32 %v4482_v27, %v2843_v52 }
  0xd1   :  { %3568 = vmatmul.mubr.f32.gmra.mrb[6].mxu1 %v4076_v60  ;;  %3414 = vmatprep.mubr.f32.mxu0 %v4086_v50  ;;  %v4519_v18 = vsel %vm2895_vm5, 1.0, %v3832_v49 }
  0xd2   :  { %3570 = vmatprep.mubr.f32.mxu1 %v4092_v1  ;;  %v4506_v1 = vsel %vm2896_vm4, 1.0, %v3832_v49 }
  0xd4   :  { %3415 = vmatmul.mubr.f32.gmra.mrb[8].mxu0 %v4100_v38 }
  0xd5   :  { %3571 = vmatmul.mubr.f32.gmra.mrb[8].mxu1 %v4107_v30  ;;  %3417 = vmatprep.mubr.f32.mxu0 %v4117_v62 }
  0xd6   :  { %3573 = vmatprep.mubr.f32.mxu1 %v4139_v19 }
  0xd8   :  { %3418 = vmatmul.mubr.f32.gmra.mrb[10].mxu0 %v5417_v2 }
  0xd9   :  { %3574 = vmatmul.mubr.f32.gmra.mrb[10].mxu1 %v5418_v3  ;;  %3420 = vmatprep.mubr.f32.mxu0 %v5419_v39  ;;  %v95_v39 = vld [vmem:[%s4558_s15 + $0x8] sm:$0xff] }
  0xda   :  { %3576 = vmatprep.mubr.f32.mxu1 %v5420_v55 }
  0xdc   :  { %3421 = vmatmul.mubr.f32.gmra.mrb[12].mxu0 %v5421_v53 }
  0xdd   :  { %3577 = vmatmul.mubr.f32.gmra.mrb[12].mxu1 %v5422_v41  ;;  %3423 = vmatprep.mubr.f32.mxu0 %v5423_v29 }
  0xde   :  { %3579 = vmatprep.mubr.f32.mxu1 %v5424_v57 }
  0xe0   :  { %3424 = vmatmul.mubr.f32.gmra.mrb[14].mxu0 %v5425_v20 }
  0xe1   :  { %3580 = vmatmul.mubr.f32.gmra.mrb[14].mxu1 %v5426_v56 }
 0x197   :  { %v3404_v8 = vpop.f32.mrb[0].mxu0 }
 0x198   :  { %v4491_v12 = vmax.f32 %v3404_v8, 0.0  ;;  %v3560_v30 = vpop.f32.mrb[0].mxu1  ;;  %v1173_v37 = vpop.f32.mrb[1].mxu0 }
 0x199   :  { %v4494_v38 = vmax.f32 %v3560_v30, 0.0  ;;  %v4498_v40 = vmax.f32 %v1173_v37, 0.0  ;;  %v2491_v50 = vpop.f32.mrb[1].mxu1 }
 0x19a   :  { %3744 = vrsqrt.f32 %v4491_v12  ;;  %v4509_v10 = vmax.f32 %v2491_v50, 0.0  ;;  %vm1292_vm6 = vcmp.eq.f32.partialorder %v4491_v12, inf  ;;  %vm1294_vm7 = vcmp.eq.f32.partialorder %v4491_v12, 0.0 }
 0x19b   :  { %3746 = vrsqrt.f32 %v4494_v38  ;;  %v3407_v60 = vpop.f32.mrb[2].mxu0  ;;  %v1295_v0 = vand.u32 2147483648, %v4491_v12  ;;  %vm2610_vm8 = vcmp.eq.f32.partialorder %v4494_v38, inf  ;;  %vm2612_vm9 = vcmp.eq.f32.partialorder %v4494_v38, 0.0 }
 0x19c   :  { %3748 = vrsqrt.f32 %v4498_v40  ;;  %v3563_v19 = vpop.f32.mrb[2].mxu1  ;;  %v1185_v62 = vpop.f32.mrb[3].mxu0  ;;  %v4511_v9 = vmax.f32 %v3407_v60, 0.0  ;;  %v2613_v54 = vand.u32 2147483648, %v4494_v38  ;;  %vm1285_vm10 = vcmp.eq.f32.partialorder %v4498_v40, inf }
 0x19d   :  { %v4513_v47 = vmax.f32 %v3563_v19, 0.0  ;;  %v2503_v43 = vpop.f32.mrb[3].mxu1  ;;  %v4521_v21 = vmax.f32 %v1185_v62, 0.0  ;;  %3750 = vrsqrt.f32 %v4509_v10  ;;  %vm1287_vm11 = vcmp.eq.f32.partialorder %v4498_v40, 0.0 }
 0x19e   :  { %v4530_v24 = vmax.f32 %v2503_v43, 0.0  ;;  %3752 = vrsqrt.f32 %v4511_v9  ;;  %v1288_v46 = vand.u32 2147483648, %v4498_v40  ;;  %vm2603_vm12 = vcmp.eq.f32.partialorder %v4509_v10, inf }
 0x19f   :  { %v3410_v25 = vpop.f32.mrb[4].mxu0  ;;  %3754 = vrsqrt.f32 %v4513_v47  ;;  %v2606_v4 = vand.u32 2147483648, %v4509_v10  ;;  %vm2605_vm13 = vcmp.eq.f32.partialorder %v4509_v10, 0.0  ;;  %vm1306_vm14 = vcmp.eq.f32.partialorder %v4511_v9, inf }
 0x1a0   :  { %v3566_v36 = vpop.f32.mrb[4].mxu1  ;;  %v1197_v6 = vpop.f32.mrb[5].mxu0  ;;  %3756 = vrsqrt.f32 %v4521_v21  ;;  %v1309_v16 = vand.u32 2147483648, %v4511_v9  ;;  %v4567_v45 = vmax.f32 %v3410_v25, 0.0  ;;  %vm1308_vm15 = vcmp.eq.f32.partialorder %v4511_v9, 0.0 }
 0x1a1   :  { %v2515_v61 = vpop.f32.mrb[5].mxu1  ;;  %3758 = vrsqrt.f32 %v4530_v24  ;;  %v4569_v31 = vmax.f32 %v3566_v36, 0.0  ;;  %vm2624_vm0 = vcmp.eq.f32.partialorder %v4513_v47, inf  ;;  %v2627_v11 = vand.u32 2147483648, %v4513_v47 }
 0x1a2   :  { %v1302_v33 = vand.u32 2147483648, %v4521_v21  ;;  %vm2626_vm1 = vcmp.eq.f32.partialorder %v4513_v47, 0.0  ;;  %vm1299_vm3 = vcmp.eq.f32.partialorder %v4521_v21, inf  ;;  %v2620_v53 = vand.u32 2147483648, %v4530_v24 }
 0x1a3   :  { %v3413_v63 = vpop.f32.mrb[6].mxu0  ;;  %3760 = vrsqrt.f32 %v4567_v45  ;;  %v4586_v41 = vmax.f32 %v1197_v6, 0.0  ;;  %vm1301_vm4 = vcmp.eq.f32.partialorder %v4521_v21, 0.0  ;;  %v4594_v20 = vmax.f32 %v2515_v61, 0.0 }
 0x1a4   :  { %v3745_v14 = vpop.eup %3744  ;;  %v3569_v51 = vpop.f32.mrb[6].mxu1  ;;  %3762 = vrsqrt.f32 %v4569_v31  ;;  %vm2617_vm5 = vcmp.eq.f32.partialorder %v4530_v24, inf  ;;  %v4605_v28 = vmax.f32 %v3413_v63, 0.0  ;;  %v1323_v52 = vand.u32 2147483648, %v4567_v45  ;;  %v97_v63 = vld [vmem:[%s4558_s15 + $0x18] sm:$0xff] }
 0x1a5   :  { %v4571_v42 = vpop.f32.mrb[7].mxu0  ;;  %v3747_v32 = vpop.eup %3746  ;;  %v1291_v44 = vmul.f32 %v3745_v14, %v4491_v12  ;;  %v4607_v58 = vmax.f32 %v3569_v51, 0.0  ;;  %3764 = vrsqrt.f32 %v4586_v41  ;;  %v2641_v51 = vand.u32 2147483648, %v4569_v31 }
 0x1a6   :  { %v4578_v2 = vpop.f32.mrb[7].mxu1  ;;  %v3749_v3 = vpop.eup %3748  ;;  %v2609_v55 = vmul.f32 %v3747_v32, %v4494_v38  ;;  %3766 = vrsqrt.f32 %v4594_v20 }
 0x1a7   :  { %v1293_v29 = vsel %vm1292_vm6, %v4491_v12, %v1291_v44  ;;  %v1284_v57 = vmul.f32 %v3749_v3, %v4498_v40  ;;  %v4596_v56 = vpop.f32.mrb[8].mxu0  ;;  %v3751_v30 = vpop.eup %3750  ;;  %vm2619_vm6 = vcmp.eq.f32.partialorder %v4530_v24, 0.0  ;;  %3768 = vrsqrt.f32 %v4605_v28 }
 0x1a8   :  { %v1296_v13 = vsel %vm1294_vm7, %v1295_v0, %v1293_v29  ;;  %v2611_v17 = vsel %vm2610_vm8, %v4494_v38, %v2609_v55  ;;  %v4609_v5 = vpop.f32.mrb[8].mxu1  ;;  %v4611_v8 = vpop.f32.mrb[9].mxu0  ;;  %v2602_v25 = vmul.f32 %v3751_v30, %v4509_v10  ;;  %vm1320_vm7 = vcmp.eq.f32.partialorder %v4567_v45, inf }
 0x1a9   :  { %v1396_v37 = vsub.f32 %v95_v39, %v1296_v13  ;;  %v2614_v12 = vsel %vm2612_vm9, %v2613_v54, %v2611_v17  ;;  %v1286_v50 = vsel %vm1285_vm10, %v4498_v40, %v1284_v57  ;;  %v4620_v60 = vpop.f32.mrb[9].mxu1  ;;  %v3753_v19 = vpop.eup %3752  ;;  %vm1322_vm8 = vcmp.eq.f32.partialorder %v4567_v45, 0.0 }
 0x1aa   :  { %v2714_v62 = vsub.f32 %v95_v39, %v2614_v12  ;;  %v1289_v43 = vsel %vm1287_vm11, %v1288_v46, %v1286_v50  ;;  %v3755_v38 = vpop.eup %3754  ;;  %v1305_v0 = vmul.f32 %v3753_v19, %v4511_v9  ;;  %vm2638_vm9 = vcmp.eq.f32.partialorder %v4569_v31, inf }
 0x1ab   :  { %v1412_v36 = vand.u32 2147483647, %v1396_v37  ;;  %v1395_v6 = vsub.f32 %v94_v26, %v1289_v43  ;;  %v4630_v61 = vpop.f32.mrb[10].mxu0  ;;  %v3757_v54 = vpop.eup %3756  ;;  %v2604_v46 = vsel %vm2603_vm12, %v4509_v10, %v2602_v25  ;;  %v2623_v14 = vmul.f32 %v3755_v38, %v4513_v47 }
 0x1ac   :  { %v2730_v40 = vand.u32 2147483647, %v2714_v62  ;;  %vm2880_vm10 = vcmp.lt.s32.totalorder %v4524_v22, %v4485_v59  ;;  %vm2640_vm11 = vcmp.eq.f32.partialorder %v4569_v31, 0.0  ;;  %v4641_v32 = vpop.f32.mrb[10].mxu1  ;;  %v4643_v44 = vpop.f32.mrb[11].mxu0  ;;  %v2607_v55 = vsel %vm2605_vm13, %v2606_v4, %v2604_v46  ;;  %v96_v4 = vld [vmem:[%s4558_s15 + $0x10] sm:$0xff] }
 0x1ad   :  { %v3759_v3 = vpop.eup %3758  ;;  %v1411_v39 = vand.u32 2147483647, %v1395_v6  ;;  %v1307_v29 = vsel %vm1306_vm14, %v4511_v9, %v1305_v0  ;;  %v1298_v57 = vmul.f32 %v3757_v54, %v4521_v21  ;;  %v4653_v13 = vpop.f32.mrb[11].mxu1  ;;  %v2713_v30 = vsub.f32 %v94_v26, %v2607_v55  ;;  %vm2897_vm13 = vmand %vm2880_vm10, %vm5338_vm2 }
 0x1ae   :  { %v2746_v17 = vadd.f32 %v2730_v40, %v1412_v36  ;;  %v1310_v37 = vsel %vm1308_vm15, %v1309_v16, %v1307_v29  ;;  %v2625_v10 = vsel %vm2624_vm0, %v4513_v47, %v2623_v14  ;;  %v2616_v19 = vmul.f32 %v3759_v3, %v4530_v24  ;;  %v3761_v9 = vpop.eup %3760 }
 0x1af   :  { %v1398_v12 = vsub.f32 %v97_v63, %v1310_v37  ;;  %v2628_v50 = vsel %vm2626_vm1, %v2627_v11, %v2625_v10  ;;  %v1300_v26 = vsel %vm1299_vm3, %v4521_v21, %v1298_v57  ;;  %v4671_v62 = vpop.f32.mrb[12].mxu0  ;;  %v2729_v43 = vand.u32 2147483647, %v2713_v30  ;;  %v3763_v36 = vpop.eup %3762 }
 0x1b0   :  { %v2960_v16 = vmul.f32 %v4506_v1, %v2746_v17  ;;  %v2716_v25 = vsub.f32 %v97_v63, %v2628_v50  ;;  %v1303_v47 = vsel %vm1301_vm4, %v1302_v33, %v1300_v26  ;;  %v4678_v11 = vpop.f32.mrb[12].mxu1  ;;  %v4680_v38 = vpop.f32.mrb[13].mxu0  ;;  %v2618_v54 = vsel %vm2617_vm5, %v4530_v24, %v2616_v19  ;;  %v99_v33 = vld [vmem:[%s4558_s15 + $0x28] sm:$0xff] }
 0x1b1   :  { %v1414_v6 = vand.u32 2147483647, %v1398_v12  ;;  %v1397_v0 = vsub.f32 %v96_v4, %v1303_v47  ;;  %v1319_v1 = vmul.f32 %v3761_v9, %v4567_v45  ;;  %v4686_v40 = vpop.f32.mrb[13].mxu1  ;;  %v2745_v46 = vadd.f32 %v2729_v43, %v1411_v39  ;;  %v3765_v39 = vpop.eup %3764 }
 0x1b2   :  { %v2732_v63 = vand.u32 2147483647, %v2716_v25  ;;  %v2621_v21 = vsel %vm2619_vm6, %v2620_v53, %v2618_v54  ;;  %v2637_v14 = vmul.f32 %v3763_v36, %v4569_v31  ;;  %vm1313_vm12 = vcmp.eq.f32.partialorder %v4586_v41, inf }
 0x1b3   :  { %v1413_v3 = vand.u32 2147483647, %v1397_v0  ;;  %v2715_v55 = vsub.f32 %v96_v4, %v2621_v21  ;;  %v1321_v29 = vsel %vm1320_vm7, %v4567_v45, %v1319_v1  ;;  %v4698_v57 = vpop.f32.mrb[14].mxu0  ;;  %v2959_v17 = vmul.f32 %v4519_v18, %v2745_v46 }
 0x1b4   :  { %v4701_v30 = vadd.f32 %v2732_v63, %v1414_v6  ;;  %v1324_v24 = vsel %vm1322_vm8, %v1323_v52, %v1321_v29  ;;  %v2639_v53 = vsel %vm2638_vm9, %v4569_v31, %v2637_v14  ;;  %v4710_v37 = vpop.f32.mrb[14].mxu1  ;;  %v4712_v10 = vpop.f32.mrb[15].mxu0  ;;  %v1312_v50 = vmul.f32 %v3765_v39, %v4586_v41  ;;  %v4722_v52 = vld [vmem:[%s4558_s15 + $0x20] sm:$0xff] }
 0x1b5   :  { %v2731_v4 = vand.u32 2147483647, %v2715_v55  ;;  %v1400_v12 = vsub.f32 %v99_v33, %v1324_v24  ;;  %v2642_v18 = vsel %vm2640_vm11, %v2641_v51, %v2639_v53  ;;  %v4717_v26 = vpop.f32.mrb[15].mxu1  ;;  %v4719_v19 = vadd.f32 %v2960_v16, %v2959_v17 }
 0x1b6   :  { %v2718_v45 = vsub.f32 %v99_v33, %v2642_v18  ;;  %v1316_v9 = vand.u32 2147483648, %v4586_v41  ;;  %v1314_v51 = vsel %vm1313_vm12, %v4586_v41, %v1312_v50  ;;  %vm1315_vm14 = vcmp.eq.f32.partialorder %v4586_v41, 0.0  ;;  %v101_v18 = vld [vmem:[%s4558_s15 + $0x38] sm:$0xff] }
 0x1b7   :  { %v2747_v43 = vadd.f32 %v2731_v4, %v1413_v3  ;;  %v1416_v31 = vand.u32 2147483647, %v1400_v12  ;;  %v4736_v47 = vmax.f32 %v4571_v42, 0.0  ;;  %v2849_v36 = vadd.s32 64, %v4473_v15 }
 0x1b8   :  { %v2734_v16 = vand.u32 2147483647, %v2718_v45  ;;  %v1317_v25 = vsel %vm1315_vm14, %v1316_v9, %v1314_v51  ;;  %v4743_v22 = vadd.s32 %v4482_v27, %v4516_v48  ;;  %v3052_v0 = vsel %vm2897_vm13, 1.0, %v3832_v49 }
 0x1b9   :  { %v1399_v6 = vsub.f32 %v4722_v52, %v1317_v25  ;;  %3770 = vrsqrt.f32 %v4607_v58  ;;  %v4751_v42 = vadd.s32 %v4482_v27, %v4533_v34  ;;  %v4755_v41 = vadd.s32 %v4482_v27, %v4527_v23 }
 0x1ba   :  { %v4746_v54 = vadd.f32 %v2734_v16, %v1416_v31  ;;  %v4759_v1 = vadd.s32 %v4482_v27, %v4545_v7  ;;  %v4763_v48 = vadd.s32 %v4482_v27, %v4536_v35  ;;  %3772 = vrsqrt.f32 %v4736_v47 }
 0x1bb   :  { %v4767_v46 = vadd.s32 72, %v4473_v15  ;;  %v4770_v34 = vadd.s32 80, %v4473_v15  ;;  %v4773_v63 = vadd.s32 %v4482_v27, %v2849_v36  ;;  %vm2631_vm15 = vcmp.eq.f32.partialorder %v4594_v20, inf  ;;  %v4847_v36 = vld [vmem:[%s4558_s15 + $0x30] sm:$0xff] }
 0x1bc   :  { %v4777_v23 = vmax.f32 %v4578_v2, 0.0  ;;  %v4780_v7 = vmax.f32 %v4596_v56, 0.0  ;;  %v4783_v35 = vmax.f32 %v4609_v5, 0.0  ;;  %v4785_v21 = vmul.f32 %v3052_v0, %v2747_v43  ;;  %v3767_v56 = vpop.eup %3766 }
 0x1bd   :  { %vm2633_vm0 = vcmp.eq.f32.partialorder %v4594_v20, 0.0  ;;  %v2634_v33 = vand.u32 2147483648, %v4594_v20  ;;  %v4790_v14 = vmax.f32 %v4611_v8, 0.0  ;;  %vm1334_vm1 = vcmp.eq.f32.partialorder %v4605_v28, inf  ;;  %v3769_v39 = vpop.eup %3768 }
 0x1be   :  { %vm1336_vm3 = vcmp.eq.f32.partialorder %v4605_v28, 0.0  ;;  %3774 = vrsqrt.f32 %v4777_v23  ;;  %v4796_v2 = vmax.f32 %v4620_v60, 0.0  ;;  %v1415_v5 = vand.u32 2147483647, %v1399_v6 }
 0x1bf   :  { %v1337_v3 = vand.u32 2147483648, %v4605_v28  ;;  %vm2652_vm4 = vcmp.eq.f32.partialorder %v4607_v58, inf  ;;  %3776 = vrsqrt.f32 %v4780_v7  ;;  %v2630_v8 = vmul.f32 %v3767_v56, %v4594_v20 }
 0x1c0   :  { %vm2654_vm5 = vcmp.eq.f32.partialorder %v4607_v58, 0.0  ;;  %3778 = vrsqrt.f32 %v4783_v35  ;;  %v4805_v55 = vmax.f32 %v4630_v61, 0.0  ;;  %v2655_v60 = vand.u32 2147483648, %v4607_v58 }
 0x1c1   :  { %vm1327_vm6 = vcmp.eq.f32.partialorder %v4736_v47, inf  ;;  %3780 = vrsqrt.f32 %v4790_v14  ;;  %v4811_v29 = vmax.f32 %v4641_v32, 0.0  ;;  %v2632_v17 = vsel %vm2631_vm15, %v4594_v20, %v2630_v8 }
 0x1c2   :  { %vm1329_vm7 = vcmp.eq.f32.partialorder %v4736_v47, 0.0  ;;  %v1330_v61 = vand.u32 2147483648, %v4736_v47  ;;  %3782 = vrsqrt.f32 %v4796_v2  ;;  %v2635_v53 = vsel %vm2633_vm0, %v2634_v33, %v2632_v17 }
 0x1c3   :  { %v3771_v24 = vpop.eup %3770  ;;  %v1333_v4 = vmul.f32 %v3769_v39, %v4605_v28  ;;  %vm2645_vm8 = vcmp.eq.f32.partialorder %v4777_v23, inf  ;;  %v4824_v32 = vmax.f32 %v4643_v44, 0.0  ;;  %v2717_v12 = vsub.f32 %v4722_v52, %v2635_v53 }
 0x1c4   :  { %v2651_v50 = vmul.f32 %v3771_v24, %v4607_v58  ;;  %vm2647_vm9 = vcmp.eq.f32.partialorder %v4777_v23, 0.0  ;;  %3784 = vrsqrt.f32 %v4805_v55  ;;  %v3773_v45 = vpop.eup %3772  ;;  %v2648_v9 = vand.u32 2147483648, %v4777_v23 }
 0x1c5   :  { %v1335_v20 = vsel %vm1334_vm1, %v4605_v28, %v1333_v4  ;;  %v1351_v44 = vand.u32 2147483648, %v4780_v7  ;;  %3786 = vrsqrt.f32 %v4811_v29  ;;  %v2733_v52 = vand.u32 2147483647, %v2717_v12 }
 0x1c6   :  { %v1338_v43 = vsel %vm1336_vm3, %v1337_v3, %v1335_v20  ;;  %v2653_v31 = vsel %vm2652_vm4, %v4607_v58, %v2651_v50  ;;  %v1326_v51 = vmul.f32 %v3773_v45, %v4736_v47  ;;  %vm1348_vm10 = vcmp.eq.f32.partialorder %v4780_v7, inf }
 0x1c7   :  { %v1402_v16 = vsub.f32 %v101_v18, %v1338_v43  ;;  %v2656_v25 = vsel %vm2654_vm5, %v2655_v60, %v2653_v31  ;;  %vm2666_vm11 = vcmp.eq.f32.partialorder %v4783_v35, inf  ;;  %v2669_v6 = vand.u32 2147483648, %v4783_v35  ;;  %v4886_v31 = vld [vmem:[%s4558_s15 + $0x40] sm:$0xff] }
 0x1c8   :  { %v3775_v28 = vpop.eup %3774  ;;  %v4851_v0 = vadd.f32 %v2733_v52, %v1415_v5  ;;  %v2720_v33 = vsub.f32 %v101_v18, %v2656_v25  ;;  %v1328_v56 = vsel %vm1327_vm6, %v4736_v47, %v1326_v51  ;;  %vm1341_vm12 = vcmp.eq.f32.partialorder %v4790_v14, inf }
 0x1c9   :  { %v3777_v3 = vpop.eup %3776  ;;  %v1331_v58 = vsel %vm1329_vm7, %v1330_v61, %v1328_v56  ;;  %v2644_v8 = vmul.f32 %v3775_v28, %v4777_v23  ;;  %vm1350_vm13 = vcmp.eq.f32.partialorder %v4780_v7, 0.0  ;;  %vm2668_vm14 = vcmp.eq.f32.partialorder %v4783_v35, 0.0 }
 0x1ca   :  { %vm1343_vm15 = vcmp.eq.f32.partialorder %v4790_v14, 0.0  ;;  %3788 = vrsqrt.f32 %v4824_v32  ;;  %v3779_v5 = vpop.eup %3778  ;;  %v1401_v60 = vsub.f32 %v4847_v36, %v1331_v58  ;;  %v1344_v39 = vand.u32 2147483648, %v4790_v14 }
 0x1cb   :  { %vm2659_vm0 = vcmp.eq.f32.partialorder %v4796_v2, inf  ;;  %vm2661_vm1 = vcmp.eq.f32.partialorder %v4796_v2, 0.0  ;;  %v3781_v47 = vpop.eup %3780  ;;  %v2646_v17 = vsel %vm2645_vm8, %v4777_v23, %v2644_v8  ;;  %v1347_v61 = vmul.f32 %v3777_v3, %v4780_v7 }
 0x1cc   :  { %v2665_v24 = vmul.f32 %v3779_v5, %v4783_v35  ;;  %v2662_v53 = vand.u32 2147483648, %v4796_v2  ;;  %v3783_v4 = vpop.eup %3782  ;;  %v2649_v12 = vsel %vm2647_vm9, %v2648_v9, %v2646_v17  ;;  %v1340_v18 = vmul.f32 %v3781_v47, %v4790_v14 }
 0x1cd   :  { %vm1362_vm3 = vcmp.eq.f32.partialorder %v4805_v55, inf  ;;  %v1365_v50 = vand.u32 2147483648, %v4805_v55  ;;  %v2683_v45 = vand.u32 2147483648, %v4811_v29  ;;  %v4880_v20 = vand.u32 2147483647, %v1402_v16 }
 0x1ce   :  { %v4882_v52 = vand.u32 2147483647, %v2720_v33  ;;  %v2719_v43 = vsub.f32 %v4847_v36, %v2649_v12  ;;  %v2658_v51 = vmul.f32 %v3783_v4, %v4796_v2  ;;  %v3785_v23 = vpop.eup %3784  ;;  %v1342_v9 = vsel %vm1341_vm12, %v4790_v14, %v1340_v18  ;;  %v4978_v4 = vld [vmem:[%s4558_s15 + $0x48] sm:$0xff]  ;;  %v4983_v18 = vld [vmem:[%s4558_s15 + $0x50] sm:$0xff] }
 0x1cf   :  { %vm2680_vm4 = vcmp.eq.f32.partialorder %v4811_v29, inf  ;;  %vm1355_vm5 = vcmp.eq.f32.partialorder %v4824_v32, inf  ;;  %v4895_v16 = vmax.f32 %v4653_v13, 0.0  ;;  %v4898_v25 = vmax.f32 %v4671_v62, 0.0  ;;  %v3787_v36 = vpop.eup %3786 }
 0x1d0   :  { %v1349_v28 = vsel %vm1348_vm10, %v4780_v7, %v1347_v61  ;;  %v2667_v33 = vsel %vm2666_vm11, %v4783_v35, %v2665_v24  ;;  %v1345_v56 = vsel %vm1343_vm15, %v1344_v39, %v1342_v9  ;;  %v2660_v13 = vsel %vm2659_vm0, %v4796_v2, %v2658_v51 }
 0x1d1   :  { %vm1364_vm6 = vcmp.eq.f32.partialorder %v4805_v55, 0.0  ;;  %v1403_v62 = vsub.f32 %v4886_v31, %v1345_v56  ;;  %v4915_v3 = vsel %vm2661_vm1, %v2662_v53, %v2660_v13  ;;  %vm1357_vm7 = vcmp.eq.f32.partialorder %v4824_v32, 0.0 }
 0x1d2   :  { %3790 = vrsqrt.f32 %v4895_v16  ;;  %v4919_v58 = vand.u32 2147483647, %v1401_v60  ;;  %v2721_v14 = vsub.f32 %v4886_v31, %v4915_v3  ;;  %v1361_v8 = vmul.f32 %v3785_v23, %v4805_v55 }
 0x1d3   :  { %v1358_v5 = vand.u32 2147483648, %v4824_v32  ;;  %v1352_v2 = vsel %vm1350_vm13, %v1351_v44, %v1349_v28  ;;  %v4931_v39 = vsel %vm2668_vm14, %v2669_v6, %v2667_v33  ;;  %3792 = vrsqrt.f32 %v4898_v25 }
 0x1d4   :  { %v4935_v60 = vmax.f32 %v4678_v11, 0.0  ;;  %v3789_v47 = vpop.eup %3788  ;;  %v2679_v17 = vmul.f32 %v3787_v36, %v4811_v29  ;;  %vm2682_vm8 = vcmp.eq.f32.partialorder %v4811_v29, 0.0  ;;  %v4940_v61 = vmax.f32 %v4680_v38, 0.0 }
 0x1d5   :  { %v4943_v7 = vmax.f32 %v4686_v40, 0.0  ;;  %v4946_v35 = vmax.f32 %v4698_v57, 0.0  ;;  %v4948_v44 = vand.u32 2147483647, %v2719_v43  ;;  %v1354_v11 = vmul.f32 %v3789_v47, %v4824_v32 }
 0x1d6   :  { %3794 = vrsqrt.f32 %v4935_v60  ;;  %v4953_v6 = vmax.f32 %v4710_v37, 0.0  ;;  %v1363_v38 = vsel %vm1362_vm3, %v4805_v55, %v1361_v8  ;;  %vm2673_vm9 = vcmp.eq.f32.partialorder %v4895_v16, inf }
 0x1d7   :  { %3796 = vrsqrt.f32 %v4940_v61  ;;  %v4961_v40 = vmax.f32 %v4712_v10, 0.0  ;;  %v1356_v57 = vsel %vm1355_vm5, %v4824_v32, %v1354_v11  ;;  %vm2675_vm10 = vcmp.eq.f32.partialorder %v4895_v16, 0.0 }
 0x1d8   :  { %3798 = vrsqrt.f32 %v4943_v7  ;;  %v4969_v37 = vmax.f32 %v4717_v26, 0.0  ;;  %v2681_v24 = vsel %vm2680_vm4, %v4811_v29, %v2679_v17  ;;  %v2676_v53 = vand.u32 2147483648, %v4895_v16  ;;  %v4986_v26 = vld [vmem:[%s4558_s15 + $0x58] sm:$0xff]  ;;  %v5030_v29 = vld [vmem:[%s4558_s15 + $0x68] sm:$0xff] }
 0x1d9   :  { %v1372_v10 = vand.u32 2147483648, %v4940_v61  ;;  %3800 = vrsqrt.f32 %v4946_v35  ;;  %v2690_v12 = vand.u32 2147483648, %v4943_v7  ;;  %v1359_v43 = vsel %vm1357_vm7, %v1358_v5, %v1356_v57 }
 0x1da   :  { %3802 = vrsqrt.f32 %v4953_v6  ;;  %v1366_v51 = vsel %vm1364_vm6, %v1365_v50, %v1363_v38  ;;  %vm1369_vm11 = vcmp.eq.f32.partialorder %v4940_v61, inf  ;;  %vm1376_vm12 = vcmp.eq.f32.partialorder %v4898_v25, inf }
 0x1db   :  { %3804 = vrsqrt.f32 %v4961_v40  ;;  %vm1378_vm13 = vcmp.eq.f32.partialorder %v4898_v25, 0.0  ;;  %v1379_v23 = vand.u32 2147483648, %v4898_v25  ;;  %vm2687_vm14 = vcmp.eq.f32.partialorder %v4943_v7, inf }
 0x1dc   :  { %v3791_v9 = vpop.eup %3790  ;;  %3806 = vrsqrt.f32 %v4969_v37  ;;  %vm1371_vm15 = vcmp.eq.f32.partialorder %v4940_v61, 0.0  ;;  %v1386_v55 = vand.u32 2147483648, %v4961_v40  ;;  %v1393_v32 = vand.u32 2147483648, %v4946_v35 }
 0x1dd   :  { %v1404_v50 = vsub.f32 %v4978_v4, %v1352_v2  ;;  %v2672_v36 = vmul.f32 %v3791_v9, %v4895_v16  ;;  %vm1390_vm0 = vcmp.eq.f32.partialorder %v4946_v35, inf  ;;  %v1405_v28 = vsub.f32 %v4983_v18, %v1359_v43  ;;  %v3793_v13 = vpop.eup %3792 }
 0x1de   :  { %v1406_v33 = vsub.f32 %v4986_v26, %v1366_v51  ;;  %v5007_v56 = vand.u32 2147483647, %v1403_v62  ;;  %vm1392_vm1 = vcmp.eq.f32.partialorder %v4946_v35, 0.0  ;;  %v5016_v5 = vsel %vm2682_vm8, %v2683_v45, %v2681_v24 }
 0x1df   :  { %v5010_v8 = vand.u32 2147483647, %v1404_v50  ;;  %vm2689_vm3 = vcmp.eq.f32.partialorder %v4943_v7, 0.0  ;;  %vm2694_vm4 = vcmp.eq.f32.partialorder %v4935_v60, inf  ;;  %v2674_v62 = vsel %vm2673_vm9, %v4895_v16, %v2672_v36 }
 0x1e0   :  { %v1375_v2 = vmul.f32 %v3793_v13, %v4898_v25  ;;  %vm1383_vm5 = vcmp.eq.f32.partialorder %v4961_v40, inf  ;;  %v5025_v47 = vand.u32 2147483647, %v1405_v28  ;;  %v5027_v17 = vand.u32 2147483647, %v1406_v33  ;;  %v3795_v11 = vpop.eup %3794  ;;  %v106_v28 = vld [vmem:[%s4558_s15 + $0x60] sm:$0xff] }
 0x1e1   :  { %vm1385_vm6 = vcmp.eq.f32.partialorder %v4961_v40, 0.0  ;;  %v5035_v45 = vsel %vm2675_vm10, %v2676_v53, %v2674_v62  ;;  %vm2696_vm7 = vcmp.eq.f32.partialorder %v4935_v60, 0.0  ;;  %v2697_v38 = vand.u32 2147483648, %v4935_v60  ;;  %v3797_v57 = vpop.eup %3796 }
 0x1e2   :  { %v2693_v24 = vmul.f32 %v3795_v11, %v4935_v60  ;;  %v1377_v43 = vsel %vm1376_vm12, %v4898_v25, %v1375_v2  ;;  %vm2703_vm10 = vcmp.eq.f32.partialorder %v4969_v37, 0.0  ;;  %v2704_v16 = vand.u32 2147483648, %v4969_v37  ;;  %v3799_v53 = vpop.eup %3798 }
 0x1e3   :  { %v1368_v51 = vmul.f32 %v3797_v57, %v4940_v61  ;;  %v1380_v9 = vsel %vm1378_vm13, %v1379_v23, %v1377_v43  ;;  %vm2708_vm2 = vcmp.eq.f32.partialorder %v4953_v6, inf  ;;  %vm2710_vm9 = vcmp.eq.f32.partialorder %v4953_v6, 0.0  ;;  %v3801_v50 = vpop.eup %3800 }
 0x1e4   :  { %vm2882_vm8 = vcmp.lt.s32.totalorder %v4751_v42, %v4485_v59  ;;  %v2686_v36 = vmul.f32 %v3799_v53, %v4943_v7  ;;  %v1408_v33 = vsub.f32 %v5030_v29, %v1380_v9  ;;  %v2695_v13 = vsel %vm2694_vm4, %v4935_v60, %v2693_v24  ;;  %v3803_v23 = vpop.eup %3802  ;;  %v109_v53 = vld [vmem:[%s4558_s15 + $0x78] sm:$0xff] }
 0x1e5   :  { %v2711_v25 = vand.u32 2147483648, %v4953_v6  ;;  %v1370_v62 = vsel %vm1369_vm11, %v4940_v61, %v1368_v51  ;;  %v1389_v2 = vmul.f32 %v3801_v50, %v4946_v35  ;;  %v2698_v11 = vsel %vm2696_vm7, %v2697_v38, %v2695_v13  ;;  %v3805_v43 = vpop.eup %3804 }
 0x1e6   :  { %v2722_v57 = vsub.f32 %v4978_v4, %v4931_v39  ;;  %v1373_v24 = vsel %vm1371_vm15, %v1372_v10, %v1370_v62  ;;  %v1424_v9 = vand.u32 2147483647, %v1408_v33  ;;  %v2688_v51 = vsel %vm2687_vm14, %v4943_v7, %v2686_v36  ;;  %v3807_v60 = vpop.eup %3806  ;;  %v108_v36 = vld [vmem:[%s4558_s15 + $0x70] sm:$0xff] }
 0x1e7   :  { %v2707_v50 = vmul.f32 %v3803_v23, %v4953_v6  ;;  %vm2883_vm11 = vcmp.lt.s32.totalorder %v4755_v41, %v4485_v59  ;;  %v1382_v39 = vmul.f32 %v3805_v43, %v4961_v40  ;;  %v1391_v4 = vsel %vm1390_vm0, %v4946_v35, %v1389_v2 }
 0x1e8   :  { %v1407_v38 = vsub.f32 %v106_v28, %v1373_v24  ;;  %v2691_v61 = vsel %vm2689_vm3, %v2690_v12, %v2688_v51  ;;  %vm2884_vm12 = vcmp.lt.s32.totalorder %v4759_v1, %v4485_v59  ;;  %v2700_v10 = vmul.f32 %v3807_v60, %v4969_v37 }
 0x1e9   :  { %v1394_v33 = vsel %vm1392_vm1, %v1393_v32, %v1391_v4  ;;  %v2709_v13 = vsel %vm2708_vm2, %v4953_v6, %v2707_v50  ;;  %v2723_v23 = vsub.f32 %v4983_v18, %v5035_v45  ;;  %v1384_v7 = vsel %vm1383_vm5, %v4961_v40, %v1382_v39 }
 0x1ea   :  { %v1410_v12 = vsub.f32 %v109_v53, %v1394_v33  ;;  %v1423_v62 = vand.u32 2147483647, %v1407_v38  ;;  %v2712_v2 = vsel %vm2710_vm9, %v2711_v25, %v2709_v13  ;;  %v1387_v35 = vsel %vm1385_vm6, %v1386_v55, %v1384_v7 }
 0x1eb   :  { %vm5427_vm2 = vcmp.eq.f32.partialorder %v4969_v37, inf  ;;  %v2724_v18 = vsub.f32 %v4986_v26, %v5016_v5  ;;  %v2725_v45 = vsub.f32 %v106_v28, %v2691_v61  ;;  %v1409_v43 = vsub.f32 %v108_v36, %v1387_v35 }
 0x1ec   :  { %v2702_v32 = vsel %vm5427_vm2, %v4969_v37, %v2700_v10  ;;  %v1426_v24 = vand.u32 2147483647, %v1410_v12  ;;  %v2726_v6 = vsub.f32 %v5030_v29, %v2698_v11  ;;  %v2728_v50 = vsub.f32 %v109_v53, %v2712_v2 }
 0x1ed   :  { %v2705_v51 = vsel %vm2703_vm10, %v2704_v16, %v2702_v32  ;;  %v2737_v40 = vand.u32 2147483647, %v2721_v14  ;;  %v2738_v55 = vand.u32 2147483647, %v2722_v57  ;;  %vm5428_vm13 = vcmp.lt.s32.totalorder %v4485_v59, 16 }
 0x1ee   :  { %v2727_v25 = vsub.f32 %v108_v36, %v2705_v51  ;;  %vm5429_vm14 = vcmp.lt.s32.totalorder %v4743_v22, %v4485_v59  ;;  %v1425_v37 = vand.u32 2147483647, %v1409_v43  ;;  %v2739_v5 = vand.u32 2147483647, %v2723_v23  ;;  %vm5432_vm0 = vmmov %vm5428_vm13 }
 0x1ef   :  { %vm5127_vm15 = vmand %vm5429_vm14, %vm5428_vm13  ;;  %v2740_v16 = vand.u32 2147483647, %v2724_v18  ;;  %v2751_v29 = vadd.f32 %v4948_v44, %v4919_v58  ;;  %v2741_v28 = vand.u32 2147483647, %v2725_v45  ;;  %v2742_v11 = vand.u32 2147483647, %v2726_v6 }
 0x1f0   :  { %v2743_v31 = vand.u32 2147483647, %v2727_v25  ;;  %v2752_v3 = vadd.f32 %v4882_v52, %v4880_v20  ;;  %vm2899_vm1 = vmand %vm2882_vm8, %vm5432_vm0  ;;  %v2744_v22 = vand.u32 2147483647, %v2728_v50  ;;  %v2753_v14 = vadd.f32 %v2737_v40, %v5007_v56 }
 0x1f1   :  { %v2754_v57 = vadd.f32 %v2738_v55, %v5010_v8  ;;  %v2755_v53 = vadd.f32 %v2739_v5, %v5025_v47  ;;  %v2756_v58 = vadd.f32 %v2740_v16, %v5027_v17  ;;  %v2757_v44 = vadd.f32 %v2741_v28, %v1423_v62  ;;  %vm5433_vm3 = vmmov %vm5432_vm0 }
 0x1f2   :  { %v5144_v60 = vadd.f32 %v2742_v11, %v1424_v9  ;;  %v5146_v39 = vadd.f32 %v2743_v31, %v1425_v37  ;;  %v3053_v20 = vsel %vm5127_vm15, 1.0, %v3832_v49  ;;  %v5151_v42 = vadd.f32 %v2744_v22, %v1426_v24  ;;  %vm2900_vm4 = vmand %vm2883_vm11, %vm5433_vm3 }
 0x1f3   :  { %v3054_v52 = vsel %vm2899_vm1, 1.0, %v3832_v49  ;;  %v2852_v56 = vadd.s32 88, %v4473_v15  ;;  %v2867_v8 = vadd.s32 %v4482_v27, %v4767_v46  ;;  %vm2885_vm5 = vcmp.lt.s32.totalorder %v4763_v48, %v4485_v59  ;;  %vm5434_vm6 = vmmov %vm5432_vm0 }
 0x1f4   :  { %vm2901_vm7 = vmand %vm2884_vm12, %vm5434_vm6  ;;  %v2853_v47 = vadd.s32 96, %v4473_v15  ;;  %v2868_v41 = vadd.s32 %v4482_v27, %v4770_v34  ;;  %vm2886_vm8 = vcmp.lt.s32.totalorder %v4773_v63, %v4485_v59  ;;  %v2962_v17 = vmul.f32 %v3053_v20, %v4701_v30 }
 0x1f5   :  { %v2963_v46 = vmul.f32 %v3054_v52, %v4851_v0  ;;  %v2976_v48 = vadd.f32 %v4719_v19, %v4785_v21  ;;  %vm5435_vm9 = vmmov %vm5432_vm0  ;;  %v3055_v9 = vsel %vm2900_vm4, 1.0, %v3832_v49  ;;  %v3056_v34 = vsel %vm2901_vm7, 1.0, %v3832_v49 }
 0x1f6   :  { %vm5180_vm10 = vmand %vm2885_vm5, %vm5435_vm9  ;;  %v2854_v4 = vadd.s32 104, %v4473_v15  ;;  %v2869_v63 = vadd.s32 %v4482_v27, %v2852_v56  ;;  %vm2887_vm11 = vcmp.lt.s32.totalorder %v2867_v8, %v4485_v59  ;;  %v2855_v19 = vadd.s32 112, %v4473_v15 }
 0x1f7   :  { %vm5438_vm12 = vmmov %vm5432_vm0  ;;  %v2977_v30 = vadd.f32 %v2976_v48, %v2962_v17  ;;  %v2870_v21 = vadd.s32 %v4482_v27, %v2853_v47  ;;  %vm2888_vm13 = vcmp.lt.s32.totalorder %v2868_v41, %v4485_v59  ;;  %v2964_v0 = vmul.f32 %v3055_v9, %v4746_v54 }
 0x1f8   :  { %vm2903_vm2 = vmand %vm2886_vm8, %vm5438_vm12  ;;  %v2965_v38 = vmul.f32 %v3056_v34, %v2751_v29  ;;  %v3057_v10 = vsel %vm5180_vm10, 1.0, %v3832_v49  ;;  %v2871_v33 = vadd.s32 %v4482_v27, %v2854_v4  ;;  %v2856_v54 = vadd.s32 120, %v4473_v15 }
 0x1f9   :  { %v2978_v61 = vadd.f32 %v2977_v30, %v2963_v46  ;;  %vm5439_vm14 = vmmov %vm5432_vm0  ;;  %v3058_v36 = vsel %vm2903_vm2, 1.0, %v3832_v49  ;;  %vm2889_vm0 = vcmp.lt.s32.totalorder %v2869_v63, %v4485_v59  ;;  %v2872_v23 = vadd.s32 %v4482_v27, %v2855_v19 }
 0x1fa   :  { %vm2904_vm15 = vmand %vm2887_vm11, %vm5439_vm14  ;;  %vm2890_vm4 = vcmp.lt.s32.totalorder %v2870_v21, %v4485_v59  ;;  %v2966_v7 = vmul.f32 %v3057_v10, %v2752_v3  ;;  %v2967_v12 = vmul.f32 %v3058_v36, %v2753_v14  ;;  %vm2891_vm7 = vcmp.lt.s32.totalorder %v2871_v33, %v4485_v59 }
 0x1fb   :  { %vm5440_vm1 = vmmov %vm5433_vm3  ;;  %v2979_v13 = vadd.f32 %v2978_v61, %v2964_v0  ;;  %v3059_v2 = vsel %vm2904_vm15, 1.0, %v3832_v49  ;;  %v2873_v32 = vadd.s32 %v4482_v27, %v2856_v54  ;;  %vm2892_vm10 = vcmp.lt.s32.totalorder %v2872_v23, %v4485_v59 }
 0x1fc   :  { %vm2905_vm3 = vmand %vm2888_vm13, %vm5440_vm1  ;;  %v2968_v18 = vmul.f32 %v3059_v2, %v2754_v57 }
 0x1fd   :  { %v2980_v62 = vadd.f32 %v2979_v13, %v2965_v38  ;;  %vm5441_vm5 = vmmov %vm5440_vm1  ;;  %v3060_v35 = vsel %vm2905_vm3, 1.0, %v3832_v49  ;;  %vm2893_vm14 = vcmp.lt.s32.totalorder %v2873_v32, %v4485_v59 }
 0x1fe   :  { %vm2906_vm6 = vmand %vm2889_vm0, %vm5441_vm5  ;;  %v2969_v45 = vmul.f32 %v3060_v35, %v2755_v53 }
 0x1ff   :  { %vm5442_vm8 = vmmov %vm5440_vm1  ;;  %v2981_v15 = vadd.f32 %v2980_v62, %v2966_v7  ;;  %v3061_v24 = vsel %vm2906_vm6, 1.0, %v3832_v49 }
 0x200   :  { %vm2907_vm9 = vmand %vm2890_vm4, %vm5442_vm8  ;;  %v2970_v25 = vmul.f32 %v3061_v24, %v2756_v58 }
 0x201   :  { %v2982_v43 = vadd.f32 %v2981_v15, %v2967_v12  ;;  %vm5443_vm11 = vmmov %vm5440_vm1  ;;  %v3062_v51 = vsel %vm2907_vm9, 1.0, %v3832_v49 }
 0x202   :  { %vm2908_vm12 = vmand %vm2891_vm7, %vm5443_vm11  ;;  %v2971_v27 = vmul.f32 %v3062_v51, %v2757_v44 }
 0x203   :  { %vm5444_vm2 = vmmov %vm5440_vm1  ;;  %v2983_v6 = vadd.f32 %v2982_v43, %v2968_v18  ;;  %v3063_v40 = vsel %vm2908_vm12, 1.0, %v3832_v49 }
 0x204   :  { %vm2909_vm13 = vmand %vm2892_vm10, %vm5444_vm2  ;;  %v2972_v37 = vmul.f32 %v3063_v40, %v5144_v60 }
 0x205   :  { %v2984_v50 = vadd.f32 %v2983_v6, %v2969_v45  ;;  %v3064_v55 = vsel %vm2909_vm13, 1.0, %v3832_v49  ;;  %vm5445_vm15 = vmmov %vm5440_vm1 }
 0x206   :  { %vm2910_vm0 = vmand %vm2893_vm14, %vm5445_vm15  ;;  %v2973_v5 = vmul.f32 %v3064_v55, %v5146_v39 }
 0x207   :  { %v2985_v26 = vadd.f32 %v2984_v50, %v2970_v25  ;;  %v3065_v29 = vsel %vm2910_vm0, 1.0, %v3832_v49 }
 0x208   :  { %v2974_v11 = vmul.f32 %v3065_v29, %v5151_v42 }
 0x209   :  { %v2986_v16 = vadd.f32 %v2985_v26, %v2971_v27 }
 0x20b   :  { %v2987_v28 = vadd.f32 %v2986_v16, %v2972_v37 }
 0x20d   :  { %v2988_v31 = vadd.f32 %v2987_v28, %v2973_v5 }
 0x20f   :  { %v2989_v3 = vadd.f32 %v2988_v31, %v2974_v11 }
 0x211   :  { %2990 = vst [vmem:[#allocation6] sm:$0xff] %v2989_v3 }
 0x212   :  { %3819 = shalt.err (!%p3816_p6)
}
 0x213   :  { %s3820_s20 = scalar_lea.hbm %s5249_s5, 128 }
 0x214   :  { %p3821_p7 = scmp.ne.s32.totalorder %s5249_s5, %s3820_s20  ;;  %p3824_p8 = scmp.lt.u32.totalorder %s3820_s20, %s5249_s5 }
 0x216   :  { %p3826_p9 = pnand %p3824_p8, %p3821_p7 }
 0x218   :  { %3829 = shalt.err (!%p3826_p9)
}
 0x219   :  { %3000 = dma.vmem_to_hbm [thread:$0]  %s2998_s16, 128, %s5249_s5, [#allocation7]  }
 0x21a   :  { %3830 = dma.done.wait [#allocation7], 128  }
 0x21b   :  { %3831 = vsyncadd [#allocation7], 4294967168 }
 0x21c   :  { %3004 = vsyncpa [#allocation7], 1 }

</bundles_post_ra>
